<compile_context>
chip_gen: v5e
topology: v5e:2x2
jax: 0.10.0
libtpu: 0.0.40
codegen_flags: <defaults>
</compile_context>

<pallas_src>
import functools
import math

import jax
import jax.numpy as jnp
from jax import lax
from jax.experimental import pallas as pl
from jax.experimental.pallas import tpu as pltpu


# ----------------------------- shared math helpers -----------------------------
def _softmax_last(x):
    m = jnp.max(x, axis=-1, keepdims=True)
    e = jnp.exp(x - m)
    return e / jnp.sum(e, axis=-1, keepdims=True)


def _layer_norm_last(x, eps=1e-5):
    # torch LayerNorm with weight=1, bias=0 (module init: ones / zeros).
    mu = jnp.mean(x, axis=-1, keepdims=True)
    xc = x - mu
    var = jnp.mean(xc * xc, axis=-1, keepdims=True)
    return xc * lax.rsqrt(var + eps)


# ----------------------------- Pallas kernels -----------------------------
def _mha_core_kernel(xq_ref, xk_ref, xv_ref, wqkv_ref, a_bd_ref, at_bd_ref,
                     mask_ref, attn_ref, vvv_ref):
    """Per grid step: `bb` batches of folded QKV projection + double attention.

    All heads are processed together via block-diagonal A matrices, so every
    matmul is a full-width (>=128 output lanes) MXU op.  Packed layouts:
      attn_ref[bi, s, h*D+d] = attn_VV[b, h, d, s]
      vvv_ref [bi, s, h*D+e] = VVV[b, h, s, e]
    """
    bb, S, E = xq_ref.shape
    HD = a_bd_ref.shape[0]

    # One projection matmul for Q, K, V of every batch in this block:
    # rows = [xq batches | xk batches | xv batches], cols = [Wq_eff | Wk_eff | Wv].
    x_cat = jnp.concatenate(
        [xq_ref[...].reshape(bb * S, E),
         xk_ref[...].reshape(bb * S, E),
         xv_ref[...].reshape(bb * S, E)], axis=0)                      # [3*bb*S, E]
    proj = jnp.dot(x_cat, wqkv_ref[...], preferred_element_type=jnp.float32)

    a_bd = a_bd_ref[...]      # blockdiag(A)   / sqrt(D)   [HD, HD]
    at_bd = at_bd_ref[...]    # blockdiag(A.T) / sqrt(D)   [HD, HD]
    mask = mask_ref[...]      # blockdiag(ones(D, D))      [HD, HD]

    for bi in range(bb):
        q = proj[bi * S:(bi + 1) * S, 0:HD]                            # [S, HD]
        k = proj[(bb + bi) * S:(bb + bi + 1) * S, HD:2 * HD]           # [S, HD]
        v = proj[(2 * bb + bi) * S:(2 * bb + bi + 1) * S, 2 * HD:3 * HD]

        # ---- attention 1: scores_VV = (A.T @ K_h^T)/sqrt(D), softmax over S ----
        # ka[s, h*D+d] = scores_VV[h, d, s]  (all heads, lane-dense).
        ka = jnp.dot(k, a_bd, preferred_element_type=jnp.float32)
        m1 = jnp.max(ka, axis=0, keepdims=True)
        e1 = jnp.exp(ka - m1)
        p1 = e1 * pl.reciprocal(jnp.sum(e1, axis=0, keepdims=True), approx=True)
        attn_ref[bi] = p1.astype(attn_ref.dtype)

        # VV_h = attn_VV_h @ V_h for all heads -> block-diagonal [HD, HD].
        vv = lax.dot_general(p1, v, (((0,), (0,)), ((), ())),
                             preferred_element_type=jnp.float32) * mask

        # ---- attention 2: scores_VV2 = (Q_h @ A.T)/sqrt(D), softmax over D ----
        s2 = jnp.dot(q, at_bd, preferred_element_type=jnp.float32)     # [S, HD]
        m2 = jnp.max(s2, axis=-1, keepdims=True)   # row max: valid per-group shift
        e2 = jnp.exp(s2 - m2)
        gsum = jnp.dot(e2, mask, preferred_element_type=jnp.float32)   # per-head sums
        p2 = e2 * pl.reciprocal(gsum, approx=True)

        # VVV_h = attn_VV2_h @ VV_h for all heads (vv is block-diagonal).
        vvv_ref[bi] = jnp.dot(
            p2, vv, preferred_element_type=jnp.float32).astype(vvv_ref.dtype)


def _epilogue_kernel(mix_ref, res_ref, wfc_ref, out_ref):
    """Residual + LayerNorm + FC + residual + LayerNorm over all [B*S, E] rows."""
    out1 = _layer_norm_last(mix_ref[...] + res_ref[...])
    out2 = jnp.dot(out1, wfc_ref[...], preferred_element_type=jnp.float32)
    out_ref[...] = _layer_norm_last(out2 + out1).astype(out_ref.dtype)


# ----------------------------- wrapper -----------------------------
def _tensorcores_per_chip():
    try:
        kind = jax.devices()[0].device_kind.lower()
    except Exception:
        return 1
    return 2 if ("v7" in kind or "7x" in kind) else 1


def multi_head_attention(input_q, input_k, input_v, params, *, n_heads, d_h):
    wq1, wq2 = params["wq1"], params["wq2"]     # [E, D/2], [D/2, H*D]
    wk1, wk2 = params["wk1"], params["wk2"]
    wv, wfc, a = params["wv"], params["wfc"], params["a"]

    b, s, e = input_q.shape
    hd = n_heads * d_h
    assert e == hd, "hidden_dim must equal n_heads * d_h"
    scale = 1.0 / math.sqrt(d_h)

    # --- wrapper-side weight prep (constant folding + layout plumbing) ---
    wq_eff = wq1 @ wq2                                     # [E, H*D]
    wk_eff = wk1 @ wk2                                     # [E, H*D]
    w_qkv = jnp.concatenate([wq_eff, wk_eff, wv], axis=1)  # [E, 3*H*D]
    eye_h = jnp.eye(n_heads, dtype=a.dtype)
    a_bd = jnp.kron(eye_h, a) * scale                      # blockdiag(A)/sqrt(D)
    at_bd = jnp.kron(eye_h, a.T) * scale                   # blockdiag(A.T)/sqrt(D)
    mask_bd = jnp.kron(eye_h, jnp.ones((d_h, d_h), a.dtype))

    # Batch tiling: collapse the grid on 1-TC chips (v5e/v6e); keep a parallel
    # batch axis so a 2-TC chip (v7x) can shard it across TensorCores.
    n_cores = _tensorcores_per_chip()
    if n_cores > 1 and b % n_cores == 0:
        bb = b // n_cores
    else:
        bb = b
    grid = (b // bb,)

    def per_batch(shape):
        n = len(shape)
        return pl.BlockSpec(shape, lambda i, _n=n: (i,) + (0,) * (_n - 1))

    def full(shape):
        n = len(shape)
        return pl.BlockSpec(shape, lambda i, _n=n: (0,) * _n)

    attn_packed, vvv_packed = pl.pallas_call(
        _mha_core_kernel,
        grid=grid,
        in_specs=[
            per_batch((bb, s, e)), per_batch((bb, s, e)), per_batch((bb, s, e)),
            full((e, 3 * hd)), full((hd, hd)), full((hd, hd)), full((hd, hd)),
        ],
        out_specs=(per_batch((bb, s, hd)), per_batch((bb, s, hd))),
        out_shape=(jax.ShapeDtypeStruct((b, s, hd), jnp.float32),
                   jax.ShapeDtypeStruct((b, s, hd), jnp.float32)),
        compiler_params=pltpu.CompilerParams(dimension_semantics=("parallel",)),
    )(input_q, input_k, input_v, w_qkv, a_bd, at_bd, mask_bd)

    # attn_packed[b, s, h*D+d] = attn_VV[b, h, d, s]  -> [B, H, D, S]
    attn = attn_packed.reshape(b, s, n_heads, d_h).transpose(0, 2, 3, 1)

    # torch quirk: VVV[1,1,B,H,S,D].transpose(1,2).reshape(B,-1,H*D) is a plain
    # row-major [B,H,S,D] -> [B,S,H*D] reshape.  The required sublane<->lane
    # shuffle is done here wrapper-side (layout plumbing on a few KB).
    mix = (vvv_packed.reshape(b, s, n_heads, d_h)
           .transpose(0, 2, 1, 3)
           .reshape(b, s, hd))

    out2d = pl.pallas_call(
        _epilogue_kernel,
        grid=(1,),
        in_specs=[full((b * s, e)), full((b * s, e)), full((e, e))],
        out_specs=full((b * s, e)),
        out_shape=jax.ShapeDtypeStruct((b * s, e), jnp.float32),
        compiler_params=pltpu.CompilerParams(dimension_semantics=("arbitrary",)),
    )(mix.reshape(b * s, e), input_q.reshape(b * s, e), wfc)

    return out2d.reshape(b, s, e), attn


# ----------------------------- pure-JAX reference -----------------------------
def multi_head_attention_ref(input_q, input_k, input_v, params, *, n_heads, d_h):
    wq1, wq2, wk1, wk2, wv, wfc, a = (params[k] for k in
                                      ("wq1", "wq2", "wk1", "wk2", "wv", "wfc", "a"))
    b, s, e = input_q.shape
    scale = 1.0 / math.sqrt(d_h)

    q = ((input_q @ wq1) @ wq2).reshape(b, s, n_heads, d_h).transpose(0, 2, 1, 3)
    k = ((input_k @ wk1) @ wk2).reshape(b, s, n_heads, d_h).transpose(0, 2, 1, 3)
    v = (input_v @ wv).reshape(b, s, n_heads, d_h).transpose(0, 2, 1, 3)

    scores_vv = jnp.einsum("ji,bhsj->bhis", a, k) * scale          # A.T @ K^T
    attn_vv = _softmax_last(scores_vv)                             # [B,H,D,S]
    vv = jnp.einsum("bhds,bhse->bhde", attn_vv, v)                 # [B,H,D,D]

    scores2 = jnp.einsum("bhsd,ed->bhse", q, a) * scale            # Q @ A.T
    attn2 = _softmax_last(scores2)
    vvv = jnp.einsum("bhsd,bhde->bhse", attn2, vv)                 # [B,H,S,D]

    mix = vvv.reshape(b, s, n_heads * d_h)                         # torch quirk
    out1 = _layer_norm_last(mix + input_q)
    out2 = out1 @ wfc
    out = _layer_norm_last(out2 + out1)
    return out, attn_vv


if __name__ == "__main__":
    key = jax.random.PRNGKey(0)
    n_heads, d_h = 4, 32
    hidden = n_heads * d_h        # 128 (residual requires hidden == n_heads * d_h)
    dh2 = d_h // 2                # 16
    batch, seq = 2, 8

    ks = jax.random.split(key, 10)

    def w(k, shape, fan_in):
        return jax.random.normal(k, shape, jnp.float32) / jnp.sqrt(float(fan_in))

    params = dict(
        wq1=w(ks[0], (hidden, dh2), hidden),
        wq2=w(ks[1], (dh2, n_heads * d_h), dh2),
        wk1=w(ks[2], (hidden, dh2), hidden),
        wk2=w(ks[3], (dh2, n_heads * d_h), dh2),
        wv=w(ks[4], (hidden, n_heads * d_h), hidden),
        wfc=w(ks[5], (hidden, hidden), hidden),
        a=w(ks[6], (d_h, d_h), d_h),
    )
    input_q = jax.random.normal(ks[7], (batch, seq, hidden), jnp.float32)
    input_k = jax.random.normal(ks[8], (batch, seq, hidden), jnp.float32)
    input_v = jax.random.normal(ks[9], (batch, seq, hidden), jnp.float32)

    mha = jax.jit(functools.partial(multi_head_attention, n_heads=n_heads, d_h=d_h))
    out, attn = jax.block_until_ready(mha(input_q, input_k, input_v, params))

    out_ref, attn_ref = multi_head_attention_ref(
        input_q, input_k, input_v, params, n_heads=n_heads, d_h=d_h)

    assert out.shape == (batch, seq, hidden), out.shape
    assert attn.shape == (batch, n_heads, d_h, seq), attn.shape
    assert jnp.allclose(out, out_ref, atol=3e-2, rtol=3e-2), \
        float(jnp.max(jnp.abs(out - out_ref)))
    assert jnp.allclose(attn, attn_ref, atol=3e-2, rtol=3e-2), \
        float(jnp.max(jnp.abs(attn - attn_ref)))

    print("KERNEL_OK")
</pallas_src>

<mosaic_0001>
module attributes {stable_mosaic.version = 11 : i64} {
  func.func @_mha_core_kernel(%arg0: i32, %arg1: memref<2x8x128xf32, #tpu.memory_space<vmem>>, %arg2: memref<2x8x128xf32, #tpu.memory_space<vmem>>, %arg3: memref<2x8x128xf32, #tpu.memory_space<vmem>>, %arg4: memref<128x384xf32, #tpu.memory_space<vmem>>, %arg5: memref<128x128xf32, #tpu.memory_space<vmem>>, %arg6: memref<128x128xf32, #tpu.memory_space<vmem>>, %arg7: memref<128x128xf32, #tpu.memory_space<vmem>>, %arg8: memref<2x8x128xf32, #tpu.memory_space<vmem>>, %arg9: memref<2x8x128xf32, #tpu.memory_space<vmem>>) attributes {dimension_semantics = [#tpu.dimension_semantics<parallel>], iteration_bounds = array<i64: 1>, scalar_prefetch = 0 : i64, scratch_operands = 0 : i64, tpu.core_type = #tpu.core_type<tc>, window_params = [{transform_indices = @transform_0, window_bounds = array<i64: 2, 8, 128>}, {transform_indices = @transform_1, window_bounds = array<i64: 2, 8, 128>}, {transform_indices = @transform_2, window_bounds = array<i64: 2, 8, 128>}, {pipeline_mode = #tpu.pipeline_mode<synchronous>, transform_indices = @transform_3, window_bounds = array<i64: 128, 384>}, {pipeline_mode = #tpu.pipeline_mode<synchronous>, transform_indices = @transform_4, window_bounds = array<i64: 128, 128>}, {pipeline_mode = #tpu.pipeline_mode<synchronous>, transform_indices = @transform_5, window_bounds = array<i64: 128, 128>}, {pipeline_mode = #tpu.pipeline_mode<synchronous>, transform_indices = @transform_6, window_bounds = array<i64: 128, 128>}, {transform_indices = @transform_7, window_bounds = array<i64: 2, 8, 128>}, {transform_indices = @transform_8, window_bounds = array<i64: 2, 8, 128>}]} {
    %c0 = arith.constant 0 : index
    %c0_0 = arith.constant 0 : index
    %c0_1 = arith.constant 0 : index
    %0 = vector.load %arg1[%c0, %c0_0, %c0_1] : memref<2x8x128xf32, #tpu.memory_space<vmem>>, vector<2x8x128xf32>
    %1 = vector.shape_cast %0 : vector<2x8x128xf32> to vector<16x128xf32>
    %c0_2 = arith.constant 0 : index
    %c0_3 = arith.constant 0 : index
    %c0_4 = arith.constant 0 : index
    %2 = vector.load %arg2[%c0_2, %c0_3, %c0_4] : memref<2x8x128xf32, #tpu.memory_space<vmem>>, vector<2x8x128xf32>
    %3 = vector.shape_cast %2 : vector<2x8x128xf32> to vector<16x128xf32>
    %c0_5 = arith.constant 0 : index
    %c0_6 = arith.constant 0 : index
    %c0_7 = arith.constant 0 : index
    %4 = vector.load %arg3[%c0_5, %c0_6, %c0_7] : memref<2x8x128xf32, #tpu.memory_space<vmem>>, vector<2x8x128xf32>
    %5 = vector.shape_cast %4 : vector<2x8x128xf32> to vector<16x128xf32>
    %6 = tpu.concatenate %1, %3, %5 in 0 : vector<16x128xf32>, vector<16x128xf32>, vector<16x128xf32> -> vector<48x128xf32>
    %c0_8 = arith.constant 0 : index
    %c0_9 = arith.constant 0 : index
    %7 = vector.load %arg4[%c0_8, %c0_9] : memref<128x384xf32, #tpu.memory_space<vmem>>, vector<128x384xf32>
    %cst = arith.constant dense<0.000000e+00> : vector<48x384xf32>
    %8 = tpu.matmul %6, %7, %cst {dimension_numbers = #tpu.dot_dimension_numbers<[1], [0], [0], [1], [0, 0, 1, 1], [], []>} : vector<48x128xf32>, vector<128x384xf32>, vector<48x384xf32> -> vector<48x384xf32>
    %c0_10 = arith.constant 0 : index
    %c0_11 = arith.constant 0 : index
    %9 = vector.load %arg5[%c0_10, %c0_11] : memref<128x128xf32, #tpu.memory_space<vmem>>, vector<128x128xf32>
    %c0_12 = arith.constant 0 : index
    %c0_13 = arith.constant 0 : index
    %10 = vector.load %arg6[%c0_12, %c0_13] : memref<128x128xf32, #tpu.memory_space<vmem>>, vector<128x128xf32>
    %c0_14 = arith.constant 0 : index
    %c0_15 = arith.constant 0 : index
    %11 = vector.load %arg7[%c0_14, %c0_15] : memref<128x128xf32, #tpu.memory_space<vmem>>, vector<128x128xf32>
    %12 = vector.extract_strided_slice %8 {offsets = [0, 0], sizes = [8, 128], strides = [1, 1]} : vector<48x384xf32> to vector<8x128xf32>
    %13 = vector.extract_strided_slice %8 {offsets = [16, 128], sizes = [8, 128], strides = [1, 1]} : vector<48x384xf32> to vector<8x128xf32>
    %14 = vector.extract_strided_slice %8 {offsets = [32, 256], sizes = [8, 128], strides = [1, 1]} : vector<48x384xf32> to vector<8x128xf32>
    %cst_16 = arith.constant dense<0.000000e+00> : vector<8x128xf32>
    %15 = tpu.matmul %13, %9, %cst_16 {dimension_numbers = #tpu.dot_dimension_numbers<[1], [0], [0], [1], [0, 0, 1, 1], [], []>} : vector<8x128xf32>, vector<128x128xf32>, vector<8x128xf32> -> vector<8x128xf32>
    %cst_17 = arith.constant dense<0xFF800000> : vector<128xf32>
    %16 = vector.multi_reduction <maximumf>, %15, %cst_17 [0] : vector<8x128xf32> to vector<128xf32>
    %17 = vector.shape_cast %16 : vector<128xf32> to vector<1x128xf32>
    %18 = vector.broadcast %17 : vector<1x128xf32> to vector<8x128xf32>
    %19 = arith.subf %15, %18 : vector<8x128xf32>
    %20 = math.exp %19 : vector<8x128xf32>
    %cst_18 = arith.constant dense<0.000000e+00> : vector<128xf32>
    %21 = vector.multi_reduction <add>, %20, %cst_18 [0] : vector<8x128xf32> to vector<128xf32>
    %22 = vector.shape_cast %21 : vector<128xf32> to vector<1x128xf32>
    %23 = tpu.reciprocal %22 {approx = true} : vector<1x128xf32> -> vector<1x128xf32>
    %24 = vector.broadcast %23 : vector<1x128xf32> to vector<8x128xf32>
    %25 = arith.mulf %20, %24 : vector<8x128xf32>
    %c0_19 = arith.constant 0 : index
    %c0_20 = arith.constant 0 : index
    %c0_21 = arith.constant 0 : index
    %26 = vector.load %arg8[%c0_19, %c0_20, %c0_21] : memref<2x8x128xf32, #tpu.memory_space<vmem>>, vector<1x8x128xf32>
    %27 = vector.shape_cast %26 : vector<1x8x128xf32> to vector<8x128xf32>
    %28 = vector.shape_cast %25 : vector<8x128xf32> to vector<1x8x128xf32>
    tpu.vector_store %arg8[%c0_19, %c0_20, %c0_21], %28 {strides = array<i32>} : memref<2x8x128xf32, #tpu.memory_space<vmem>>, vector<1x8x128xf32>,
    %cst_22 = arith.constant dense<0.000000e+00> : vector<128x128xf32>
    %29 = tpu.matmul %25, %14, %cst_22 {dimension_numbers = #tpu.dot_dimension_numbers<[0], [0], [1], [1], [0, 1, 1, 1], [], []>} : vector<8x128xf32>, vector<8x128xf32>, vector<128x128xf32> -> vector<128x128xf32>
    %30 = arith.mulf %29, %11 : vector<128x128xf32>
    %cst_23 = arith.constant dense<0.000000e+00> : vector<8x128xf32>
    %31 = tpu.matmul %12, %10, %cst_23 {dimension_numbers = #tpu.dot_dimension_numbers<[1], [0], [0], [1], [0, 0, 1, 1], [], []>} : vector<8x128xf32>, vector<128x128xf32>, vector<8x128xf32> -> vector<8x128xf32>
    %cst_24 = arith.constant dense<0xFF800000> : vector<8xf32>
    %32 = vector.multi_reduction <maximumf>, %31, %cst_24 [1] : vector<8x128xf32> to vector<8xf32>
    %33 = vector.shape_cast %32 : vector<8xf32> to vector<8x1xf32>
    %34 = vector.broadcast %33 : vector<8x1xf32> to vector<8x128xf32>
    %35 = arith.subf %31, %34 : vector<8x128xf32>
    %36 = math.exp %35 : vector<8x128xf32>
    %cst_25 = arith.constant dense<0.000000e+00> : vector<8x128xf32>
    %37 = tpu.matmul %36, %11, %cst_25 {dimension_numbers = #tpu.dot_dimension_numbers<[1], [0], [0], [1], [0, 0, 1, 1], [], []>} : vector<8x128xf32>, vector<128x128xf32>, vector<8x128xf32> -> vector<8x128xf32>
    %38 = tpu.reciprocal %37 {approx = true} : vector<8x128xf32> -> vector<8x128xf32>
    %39 = arith.mulf %36, %38 : vector<8x128xf32>
    %cst_26 = arith.constant dense<0.000000e+00> : vector<8x128xf32>
    %40 = tpu.matmul %39, %30, %cst_26 {dimension_numbers = #tpu.dot_dimension_numbers<[1], [0], [0], [1], [0, 0, 1, 1], [], []>} : vector<8x128xf32>, vector<128x128xf32>, vector<8x128xf32> -> vector<8x128xf32>
    %c0_27 = arith.constant 0 : index
    %c0_28 = arith.constant 0 : index
    %c0_29 = arith.constant 0 : index
    %41 = vector.load %arg9[%c0_27, %c0_28, %c0_29] : memref<2x8x128xf32, #tpu.memory_space<vmem>>, vector<1x8x128xf32>
    %42 = vector.shape_cast %41 : vector<1x8x128xf32> to vector<8x128xf32>
    %43 = vector.shape_cast %40 : vector<8x128xf32> to vector<1x8x128xf32>
    tpu.vector_store %arg9[%c0_27, %c0_28, %c0_29], %43 {strides = array<i32>} : memref<2x8x128xf32, #tpu.memory_space<vmem>>, vector<1x8x128xf32>,
    %44 = vector.extract_strided_slice %8 {offsets = [8, 0], sizes = [8, 128], strides = [1, 1]} : vector<48x384xf32> to vector<8x128xf32>
    %45 = vector.extract_strided_slice %8 {offsets = [24, 128], sizes = [8, 128], strides = [1, 1]} : vector<48x384xf32> to vector<8x128xf32>
    %46 = vector.extract_strided_slice %8 {offsets = [40, 256], sizes = [8, 128], strides = [1, 1]} : vector<48x384xf32> to vector<8x128xf32>
    %cst_30 = arith.constant dense<0.000000e+00> : vector<8x128xf32>
    %47 = tpu.matmul %45, %9, %cst_30 {dimension_numbers = #tpu.dot_dimension_numbers<[1], [0], [0], [1], [0, 0, 1, 1], [], []>} : vector<8x128xf32>, vector<128x128xf32>, vector<8x128xf32> -> vector<8x128xf32>
    %cst_31 = arith.constant dense<0xFF800000> : vector<128xf32>
    %48 = vector.multi_reduction <maximumf>, %47, %cst_31 [0] : vector<8x128xf32> to vector<128xf32>
    %49 = vector.shape_cast %48 : vector<128xf32> to vector<1x128xf32>
    %50 = vector.broadcast %49 : vector<1x128xf32> to vector<8x128xf32>
    %51 = arith.subf %47, %50 : vector<8x128xf32>
    %52 = math.exp %51 : vector<8x128xf32>
    %cst_32 = arith.constant dense<0.000000e+00> : vector<128xf32>
    %53 = vector.multi_reduction <add>, %52, %cst_32 [0] : vector<8x128xf32> to vector<128xf32>
    %54 = vector.shape_cast %53 : vector<128xf32> to vector<1x128xf32>
    %55 = tpu.reciprocal %54 {approx = true} : vector<1x128xf32> -> vector<1x128xf32>
    %56 = vector.broadcast %55 : vector<1x128xf32> to vector<8x128xf32>
    %57 = arith.mulf %52, %56 : vector<8x128xf32>
    %c1 = arith.constant 1 : index
    %c0_33 = arith.constant 0 : index
    %c0_34 = arith.constant 0 : index
    %58 = vector.load %arg8[%c1, %c0_33, %c0_34] : memref<2x8x128xf32, #tpu.memory_space<vmem>>, vector<1x8x128xf32>
    %59 = vector.shape_cast %58 : vector<1x8x128xf32> to vector<8x128xf32>
    %60 = vector.shape_cast %57 : vector<8x128xf32> to vector<1x8x128xf32>
    tpu.vector_store %arg8[%c1, %c0_33, %c0_34], %60 {strides = array<i32>} : memref<2x8x128xf32, #tpu.memory_space<vmem>>, vector<1x8x128xf32>,
    %cst_35 = arith.constant dense<0.000000e+00> : vector<128x128xf32>
    %61 = tpu.matmul %57, %46, %cst_35 {dimension_numbers = #tpu.dot_dimension_numbers<[0], [0], [1], [1], [0, 1, 1, 1], [], []>} : vector<8x128xf32>, vector<8x128xf32>, vector<128x128xf32> -> vector<128x128xf32>
    %62 = arith.mulf %61, %11 : vector<128x128xf32>
    %cst_36 = arith.constant dense<0.000000e+00> : vector<8x128xf32>
    %63 = tpu.matmul %44, %10, %cst_36 {dimension_numbers = #tpu.dot_dimension_numbers<[1], [0], [0], [1], [0, 0, 1, 1], [], []>} : vector<8x128xf32>, vector<128x128xf32>, vector<8x128xf32> -> vector<8x128xf32>
    %cst_37 = arith.constant dense<0xFF800000> : vector<8xf32>
    %64 = vector.multi_reduction <maximumf>, %63, %cst_37 [1] : vector<8x128xf32> to vector<8xf32>
    %65 = vector.shape_cast %64 : vector<8xf32> to vector<8x1xf32>
    %66 = vector.broadcast %65 : vector<8x1xf32> to vector<8x128xf32>
    %67 = arith.subf %63, %66 : vector<8x128xf32>
    %68 = math.exp %67 : vector<8x128xf32>
    %cst_38 = arith.constant dense<0.000000e+00> : vector<8x128xf32>
    %69 = tpu.matmul %68, %11, %cst_38 {dimension_numbers = #tpu.dot_dimension_numbers<[1], [0], [0], [1], [0, 0, 1, 1], [], []>} : vector<8x128xf32>, vector<128x128xf32>, vector<8x128xf32> -> vector<8x128xf32>
    %70 = tpu.reciprocal %69 {approx = true} : vector<8x128xf32> -> vector<8x128xf32>
    %71 = arith.mulf %68, %70 : vector<8x128xf32>
    %cst_39 = arith.constant dense<0.000000e+00> : vector<8x128xf32>
    %72 = tpu.matmul %71, %62, %cst_39 {dimension_numbers = #tpu.dot_dimension_numbers<[1], [0], [0], [1], [0, 0, 1, 1], [], []>} : vector<8x128xf32>, vector<128x128xf32>, vector<8x128xf32> -> vector<8x128xf32>
    %c1_40 = arith.constant 1 : index
    %c0_41 = arith.constant 0 : index
    %c0_42 = arith.constant 0 : index
    %73 = vector.load %arg9[%c1_40, %c0_41, %c0_42] : memref<2x8x128xf32, #tpu.memory_space<vmem>>, vector<1x8x128xf32>
    %74 = vector.shape_cast %73 : vector<1x8x128xf32> to vector<8x128xf32>
    %75 = vector.shape_cast %72 : vector<8x128xf32> to vector<1x8x128xf32>
    tpu.vector_store %arg9[%c1_40, %c0_41, %c0_42], %75 {strides = array<i32>} : memref<2x8x128xf32, #tpu.memory_space<vmem>>, vector<1x8x128xf32>,
    return
  }
  func.func @transform_0(%arg0: i32) -> (i32, i32, i32) {
    %c0_i32 = arith.constant 0 : i32
    %c0_i32_0 = arith.constant 0 : i32
    %c0_i32_1 = arith.constant 0 : i32
    return %arg0, %c0_i32, %c0_i32_0 : i32, i32, i32
  }
  func.func @transform_1(%arg0: i32) -> (i32, i32, i32) {
    %c0_i32 = arith.constant 0 : i32
    %c0_i32_0 = arith.constant 0 : i32
    %c0_i32_1 = arith.constant 0 : i32
    return %arg0, %c0_i32, %c0_i32_0 : i32, i32, i32
  }
  func.func @transform_2(%arg0: i32) -> (i32, i32, i32) {
    %c0_i32 = arith.constant 0 : i32
    %c0_i32_0 = arith.constant 0 : i32
    %c0_i32_1 = arith.constant 0 : i32
    return %arg0, %c0_i32, %c0_i32_0 : i32, i32, i32
  }
  func.func @transform_3(%arg0: i32) -> (i32, i32) {
    %c0_i32 = arith.constant 0 : i32
    %c0_i32_0 = arith.constant 0 : i32
    %c0_i32_1 = arith.constant 0 : i32
    return %c0_i32, %c0_i32_0 : i32, i32
  }
  func.func @transform_4(%arg0: i32) -> (i32, i32) {
    %c0_i32 = arith.constant 0 : i32
    %c0_i32_0 = arith.constant 0 : i32
    %c0_i32_1 = arith.constant 0 : i32
    return %c0_i32, %c0_i32_0 : i32, i32
  }
  func.func @transform_5(%arg0: i32) -> (i32, i32) {
    %c0_i32 = arith.constant 0 : i32
    %c0_i32_0 = arith.constant 0 : i32
    %c0_i32_1 = arith.constant 0 : i32
    return %c0_i32, %c0_i32_0 : i32, i32
  }
  func.func @transform_6(%arg0: i32) -> (i32, i32) {
    %c0_i32 = arith.constant 0 : i32
    %c0_i32_0 = arith.constant 0 : i32
    %c0_i32_1 = arith.constant 0 : i32
    return %c0_i32, %c0_i32_0 : i32, i32
  }
  func.func @transform_7(%arg0: i32) -> (i32, i32, i32) {
    %c0_i32 = arith.constant 0 : i32
    %c0_i32_0 = arith.constant 0 : i32
    %c0_i32_1 = arith.constant 0 : i32
    return %arg0, %c0_i32, %c0_i32_0 : i32, i32, i32
  }
  func.func @transform_8(%arg0: i32) -> (i32, i32, i32) {
    %c0_i32 = arith.constant 0 : i32
    %c0_i32_0 = arith.constant 0 : i32
    %c0_i32_1 = arith.constant 0 : i32
    return %arg0, %c0_i32, %c0_i32_0 : i32, i32, i32
  }
}

module attributes {stable_mosaic.version = 11 : i64} {
  func.func @_epilogue_kernel(%arg0: i32, %arg1: memref<16x128xf32, #tpu.memory_space<vmem>>, %arg2: memref<16x128xf32, #tpu.memory_space<vmem>>, %arg3: memref<128x128xf32, #tpu.memory_space<vmem>>, %arg4: memref<16x128xf32, #tpu.memory_space<vmem>>) attributes {dimension_semantics = [#tpu.dimension_semantics<arbitrary>], iteration_bounds = array<i64: 1>, scalar_prefetch = 0 : i64, scratch_operands = 0 : i64, tpu.core_type = #tpu.core_type<tc>, window_params = [{pipeline_mode = #tpu.pipeline_mode<synchronous>, transform_indices = @transform_0, window_bounds = array<i64: 16, 128>}, {pipeline_mode = #tpu.pipeline_mode<synchronous>, transform_indices = @transform_1, window_bounds = array<i64: 16, 128>}, {pipeline_mode = #tpu.pipeline_mode<synchronous>, transform_indices = @transform_2, window_bounds = array<i64: 128, 128>}, {pipeline_mode = #tpu.pipeline_mode<synchronous>, transform_indices = @transform_3, window_bounds = array<i64: 16, 128>}]} {
    %c0 = arith.constant 0 : index
    %c0_0 = arith.constant 0 : index
    %0 = vector.load %arg1[%c0, %c0_0] : memref<16x128xf32, #tpu.memory_space<vmem>>, vector<16x128xf32>
    %c0_1 = arith.constant 0 : index
    %c0_2 = arith.constant 0 : index
    %1 = vector.load %arg2[%c0_1, %c0_2] : memref<16x128xf32, #tpu.memory_space<vmem>>, vector<16x128xf32>
    %2 = arith.addf %0, %1 : vector<16x128xf32>
    %cst = arith.constant dense<0.000000e+00> : vector<16xf32>
    %3 = vector.multi_reduction <add>, %2, %cst [1] : vector<16x128xf32> to vector<16xf32>
    %4 = vector.shape_cast %3 : vector<16xf32> to vector<16x1xf32>
    %cst_3 = arith.constant 1.280000e+02 : f32
    %5 = vector.broadcast %cst_3 : f32 to vector<16x1xf32>
    %6 = arith.divf %4, %5 : vector<16x1xf32>
    %7 = vector.broadcast %6 : vector<16x1xf32> to vector<16x128xf32>
    %8 = arith.subf %2, %7 : vector<16x128xf32>
    %9 = arith.mulf %8, %8 : vector<16x128xf32>
    %cst_4 = arith.constant dense<0.000000e+00> : vector<16xf32>
    %10 = vector.multi_reduction <add>, %9, %cst_4 [1] : vector<16x128xf32> to vector<16xf32>
    %11 = vector.shape_cast %10 : vector<16xf32> to vector<16x1xf32>
    %cst_5 = arith.constant 1.280000e+02 : f32
    %12 = vector.broadcast %cst_5 : f32 to vector<16x1xf32>
    %13 = arith.divf %11, %12 : vector<16x1xf32>
    %cst_6 = arith.constant 9.99999974E-6 : f32
    %14 = vector.broadcast %cst_6 : f32 to vector<16x1xf32>
    %15 = arith.addf %13, %14 : vector<16x1xf32>
    %16 = math.rsqrt %15 : vector<16x1xf32>
    %17 = vector.broadcast %16 : vector<16x1xf32> to vector<16x128xf32>
    %18 = arith.mulf %8, %17 : vector<16x128xf32>
    %c0_7 = arith.constant 0 : index
    %c0_8 = arith.constant 0 : index
    %19 = vector.load %arg3[%c0_7, %c0_8] : memref<128x128xf32, #tpu.memory_space<vmem>>, vector<128x128xf32>
    %cst_9 = arith.constant dense<0.000000e+00> : vector<16x128xf32>
    %20 = tpu.matmul %18, %19, %cst_9 {dimension_numbers = #tpu.dot_dimension_numbers<[1], [0], [0], [1], [0, 0, 1, 1], [], []>} : vector<16x128xf32>, vector<128x128xf32>, vector<16x128xf32> -> vector<16x128xf32>
    %21 = arith.addf %20, %18 : vector<16x128xf32>
    %cst_10 = arith.constant dense<0.000000e+00> : vector<16xf32>
    %22 = vector.multi_reduction <add>, %21, %cst_10 [1] : vector<16x128xf32> to vector<16xf32>
    %23 = vector.shape_cast %22 : vector<16xf32> to vector<16x1xf32>
    %cst_11 = arith.constant 1.280000e+02 : f32
    %24 = vector.broadcast %cst_11 : f32 to vector<16x1xf32>
    %25 = arith.divf %23, %24 : vector<16x1xf32>
    %26 = vector.broadcast %25 : vector<16x1xf32> to vector<16x128xf32>
    %27 = arith.subf %21, %26 : vector<16x128xf32>
    %28 = arith.mulf %27, %27 : vector<16x128xf32>
    %cst_12 = arith.constant dense<0.000000e+00> : vector<16xf32>
    %29 = vector.multi_reduction <add>, %28, %cst_12 [1] : vector<16x128xf32> to vector<16xf32>
    %30 = vector.shape_cast %29 : vector<16xf32> to vector<16x1xf32>
    %cst_13 = arith.constant 1.280000e+02 : f32
    %31 = vector.broadcast %cst_13 : f32 to vector<16x1xf32>
    %32 = arith.divf %30, %31 : vector<16x1xf32>
    %cst_14 = arith.constant 9.99999974E-6 : f32
    %33 = vector.broadcast %cst_14 : f32 to vector<16x1xf32>
    %34 = arith.addf %32, %33 : vector<16x1xf32>
    %35 = math.rsqrt %34 : vector<16x1xf32>
    %36 = vector.broadcast %35 : vector<16x1xf32> to vector<16x128xf32>
    %37 = arith.mulf %27, %36 : vector<16x128xf32>
    %c0_15 = arith.constant 0 : index
    %c0_16 = arith.constant 0 : index
    %38 = vector.load %arg4[%c0_15, %c0_16] : memref<16x128xf32, #tpu.memory_space<vmem>>, vector<16x128xf32>
    tpu.vector_store %arg4[%c0_15, %c0_16], %37 {strides = array<i32>} : memref<16x128xf32, #tpu.memory_space<vmem>>, vector<16x128xf32>,
    return
  }
  func.func @transform_0(%arg0: i32) -> (i32, i32) {
    %c0_i32 = arith.constant 0 : i32
    %c0_i32_0 = arith.constant 0 : i32
    %c0_i32_1 = arith.constant 0 : i32
    return %c0_i32, %c0_i32_0 : i32, i32
  }
  func.func @transform_1(%arg0: i32) -> (i32, i32) {
    %c0_i32 = arith.constant 0 : i32
    %c0_i32_0 = arith.constant 0 : i32
    %c0_i32_1 = arith.constant 0 : i32
    return %c0_i32, %c0_i32_0 : i32, i32
  }
  func.func @transform_2(%arg0: i32) -> (i32, i32) {
    %c0_i32 = arith.constant 0 : i32
    %c0_i32_0 = arith.constant 0 : i32
    %c0_i32_1 = arith.constant 0 : i32
    return %c0_i32, %c0_i32_0 : i32, i32
  }
  func.func @transform_3(%arg0: i32) -> (i32, i32) {
    %c0_i32 = arith.constant 0 : i32
    %c0_i32_0 = arith.constant 0 : i32
    %c0_i32_1 = arith.constant 0 : i32
    return %c0_i32, %c0_i32_0 : i32, i32
  }
}

</mosaic_0001>

<bundles_post_ra>
// kernel: multi_head_attention.3
= control target key start
LH: loop header
LB: loop body
LE: loop exit
PB: predicated region body
PF: predicated region fallthrough
CT: control target
= control target key end

     0   :  { %s330_s0 = inlined_call_operand.vmem [shape: f32[16,128], index: 0, kind: input, shape index: {}]   ;;  %s331_s1 = inlined_call_operand.vmem [shape: f32[16,128], index: 1, kind: input, shape index: {}]   ;;  %s332_s2 = inlined_call_operand.vmem [shape: f32[128,128], index: 2, kind: input, shape index: {}]   ;;  %s333_s3 = inlined_call_operand.hbm [shape: f32[16,128], index: 3, kind: output, shape index: {}]  }
   0x1   :  { %v15_v0 = vld [vmem:[%s330_s0] sm:$0xff] }
   0x2   :  { %v17_v1 = vld [vmem:[%s331_s1] sm:$0xff] }
   0x3   :  { %v19_v2 = vadd.f32 %v17_v1, %v15_v0 }
   0x4   :  { %8 = vsyncpa [#allocation3], 0  ;;  %v16_v3 = vld [vmem:[%s330_s0 + $0x8] sm:$0xff]  ;;  %v223_v6 = vmov 128.0   ;;  %v83_v9 = vld [vmem:[%s332_s2 + $0x78] sm:$0xff]  ;;  %s225_s25 = smov 128  }
   0x5   :  { %21 = vadd.xlane.f32.xlu0 %v19_v2  ;;  %v18_v4 = vld [vmem:[%s331_s1 + $0x8] sm:$0xff]  ;;  %187 = vrcp.f32 %v223_v6  ;;  %v82_v10 = vld [vmem:[%s332_s2 + $0x70] sm:$0xff]  ;;  %84 = vmatpush.msra.mxu0 %v83_v9  ;;  %v80_v13 = vld [vmem:[%s332_s2 + $0x60] sm:$0xff]  ;;  %s155_s1 = sshll.u32 %s333_s3, 4  ;;  %s226_s26 = smov 8   ;;  %s156_s1 = int_to_ptr.hbm [resolvable:$true] %s155_s1 }
   0x6   :  { %v20_v5 = vadd.f32 %v18_v4, %v16_v3  ;;  %167 = vmatpush.msra.mxu1 %v83_v9  ;;  %v81_v11 = vld [vmem:[%s332_s2 + $0x68] sm:$0xff]  ;;  %v79_v25 = vld [vmem:[%s332_s2 + $0x58] sm:$0xff]  ;;  %v78_v26 = vld [vmem:[%s332_s2 + $0x50] sm:$0xff] }
   0x7   :  { %85 = vmatpush.msra.mxu0 %v82_v10  ;;  %v77_v27 = vld [vmem:[%s332_s2 + $0x48] sm:$0xff]  ;;  %v76_v28 = vld [vmem:[%s332_s2 + $0x40] sm:$0xff]  ;;  %v75_v29 = vld [vmem:[%s332_s2 + $0x38] sm:$0xff] }
   0x8   :  { %168 = vmatpush.msra.mxu1 %v82_v10  ;;  %v74_v30 = vld [vmem:[%s332_s2 + $0x30] sm:$0xff]  ;;  %v73_v31 = vld [vmem:[%s332_s2 + $0x28] sm:$0xff]  ;;  %v72_v32 = vld [vmem:[%s332_s2 + $0x20] sm:$0xff] }
   0x9   :  { %86 = vmatpush.msra.mxu0 %v81_v11  ;;  %v71_v33 = vld [vmem:[%s332_s2 + $0x18] sm:$0xff]  ;;  %v70_v34 = vld [vmem:[%s332_s2 + $0x10] sm:$0xff]  ;;  %v69_v35 = vld [vmem:[%s332_s2 + $0x8] sm:$0xff] }
   0xa   :  { %169 = vmatpush.msra.mxu1 %v81_v11  ;;  %v68_v36 = vld [vmem:[%s332_s2] sm:$0xff]  ;;  %s224_s2 = smov [#allocation2]  }
   0xb   :  { %v188_v7 = vpop.eup %187  ;;  %87 = vmatpush.msra.mxu0 %v80_v13  ;;  %s153_s23 = sshll.u32 %s224_s2, 4  ;;  %s154_s23 = int_to_ptr.vmem [resolvable:$true] %s153_s23 }
   0xc   :  { %v26_v8 = vmul.f32 128.0, %v188_v7  ;;  %170 = vmatpush.msra.mxu1 %v80_v13  ;;  %vm30_vm0 = vweird.f32 %v188_v7 }
   0xd   :  { %23 = vadd.xlane.f32.xlu0 %v20_v5  ;;  %88 = vmatpush.msra.mxu0 %v79_v25 }
   0xe   :  { %v27_v12 = vsub.f32 1.0, %v26_v8  ;;  %171 = vmatpush.msra.mxu1 %v79_v25 }
   0xf   :  { %89 = vmatpush.msra.mxu0 %v78_v26 }
  0x10   :  { %v28_v14 = vmul.f32 %v188_v7, %v27_v12  ;;  %172 = vmatpush.msra.mxu1 %v78_v26 }
  0x11   :  { %90 = vmatpush.msra.mxu0 %v77_v27 }
  0x12   :  { %v29_v15 = vadd.f32 %v188_v7, %v28_v14  ;;  %173 = vmatpush.msra.mxu1 %v77_v27 }
  0x13   :  { %91 = vmatpush.msra.mxu0 %v76_v28 }
  0x14   :  { %v271_v16 = vsel %vm30_vm0, %v188_v7, %v29_v15  ;;  %174 = vmatpush.msra.mxu1 %v76_v28 }
  0x15   :  { %92 = vmatpush.msra.mxu0 %v75_v29 }
  0x16   :  { %175 = vmatpush.msra.mxu1 %v75_v29 }
  0x17   :  { %93 = vmatpush.msra.mxu0 %v74_v30 }
  0x18   :  { %176 = vmatpush.msra.mxu1 %v74_v30 }
  0x19   :  { %94 = vmatpush.msra.mxu0 %v73_v31 }
  0x1a   :  { %177 = vmatpush.msra.mxu1 %v73_v31 }
  0x1b   :  { %95 = vmatpush.msra.mxu0 %v72_v32 }
  0x1c   :  { %178 = vmatpush.msra.mxu1 %v72_v32 }
  0x1d   :  { %96 = vmatpush.msra.mxu0 %v71_v33 }
  0x1e   :  { %179 = vmatpush.msra.mxu1 %v71_v33 }
  0x1f   :  { %97 = vmatpush.msra.mxu0 %v70_v34 }
  0x20   :  { %180 = vmatpush.msra.mxu1 %v70_v34 }
  0x21   :  { %98 = vmatpush.msra.mxu0 %v69_v35 }
  0x22   :  { %181 = vmatpush.msra.mxu1 %v69_v35 }
  0x23   :  { %99 = vmatpush.msra.mxu0 %v68_v36 }
  0x24   :  { %182 = vmatpush.msra.mxu1 %v68_v36 }
  0x78   :  { %v22_v17 = vpop.xlane.xlu0 %21 }
  0x79   :  { %v32_v18 = vmul.f32 %v271_v16, %v22_v17 }
  0x7b   :  { %v274_v19 = vsub.f32 %v19_v2, %v32_v18 }
  0x7d   :  { %v36_v20 = vmul.f32 %v274_v19, %v274_v19 }
  0x7f   :  { %38 = vadd.xlane.f32.xlu1 %v36_v20 }
  0x80   :  { %v24_v21 = vpop.xlane.xlu0 %23 }
  0x81   :  { %v33_v22 = vmul.f32 %v271_v16, %v24_v21 }
  0x83   :  { %v279_v23 = vsub.f32 %v20_v5, %v33_v22 }
  0x85   :  { %v37_v24 = vmul.f32 %v279_v23, %v279_v23 }
  0x87   :  { %40 = vadd.xlane.f32.xlu1 %v37_v24 }
  0xf2   :  { %v39_v37 = vpop.xlane.xlu1 %38 }
  0xf3   :  { %v42_v38 = vmul.f32 %v39_v37, %v271_v16 }
  0xf5   :  { %v44_v39 = vadd.f32 1e-05, %v42_v38 }
  0xf7   :  { %189 = vrsqrt.f32 %v44_v39  ;;  %vm52_vm2 = vweird.f32 %v44_v39 }
  0xfa   :  { %v41_v40 = vpop.xlane.xlu1 %40 }
  0xfb   :  { %v43_v41 = vmul.f32 %v41_v40, %v271_v16 }
  0xfd   :  { %v190_v42 = vpop.eup %189  ;;  %v45_v43 = vadd.f32 1e-05, %v43_v41 }
  0xfe   :  { %v47_v44 = vmul.f32 %v190_v42, %v44_v39  ;;  %vm53_vm1 = vweird.f32 %v190_v42 }
  0xff   :  { %191 = vrsqrt.f32 %v45_v43  ;;  %vm54_vm3 = vmor %vm52_vm2, %vm53_vm1  ;;  %vm62_vm5 = vweird.f32 %v45_v43 }
 0x100   :  { %v48_v45 = vmul.f32 %v190_v42, %v47_v44 }
 0x102   :  { %v49_v46 = vmul.f32 0.5, %v48_v45 }
 0x104   :  { %v50_v47 = vsub.f32 1.5, %v49_v46 }
 0x105   :  { %v192_v48 = vpop.eup %191 }
 0x106   :  { %v57_v49 = vmul.f32 %v192_v48, %v45_v43  ;;  %v51_v50 = vmul.f32 %v190_v42, %v50_v47  ;;  %vm63_vm4 = vweird.f32 %v192_v48 }
 0x107   :  { %vm64_vm6 = vmor %vm62_vm5, %vm63_vm4 }
 0x108   :  { %v58_v51 = vmul.f32 %v192_v48, %v57_v49  ;;  %v55_v52 = vsel %vm54_vm3, %v190_v42, %v51_v50 }
 0x109   :  { %v66_v53 = vmul.f32 %v55_v52, %v274_v19 }
 0x10a   :  { %v59_v54 = vmul.f32 0.5, %v58_v51 }
 0x10b   :  { %100 = vmatmul.f32.vlgmr.msra.gmra.mxu0 %v66_v53 }
 0x10c   :  { %v60_v55 = vsub.f32 1.5, %v59_v54 }
 0x10e   :  { %v61_v56 = vmul.f32 %v192_v48, %v60_v55 }
 0x110   :  { %v65_v57 = vsel %vm64_vm6, %v192_v48, %v61_v56 }
 0x111   :  { %v67_v58 = vmul.f32 %v65_v57, %v279_v23 }
 0x113   :  { %103 = vmatmul.f32.vlgmr.msra.gmra.mxu1 %v67_v58 }
 0x188   :  { %v101_v59 = vpop.f32.mrf.mxu0 }
 0x189   :  { %v102_v60 = vadd.f32 %v101_v59, %v66_v53 }
 0x18b   :  { %107 = vadd.xlane.f32.xlu2 %v102_v60 }
 0x190   :  { %v104_v61 = vpop.f32.mrf.mxu1 }
 0x191   :  { %v105_v62 = vadd.f32 %v104_v61, %v67_v58 }
 0x193   :  { %109 = vadd.xlane.f32.xlu2 %v105_v62 }
 0x1fe   :  { %v108_v63 = vpop.xlane.xlu2 %107 }
 0x1ff   :  { %v111_v0 = vmul.f32 %v108_v63, %v271_v16 }
 0x201   :  { %v113_v1 = vsub.f32 %v102_v60, %v111_v0 }
 0x203   :  { %v115_v2 = vmul.f32 %v113_v1, %v113_v1 }
 0x205   :  { %117 = vadd.xlane.f32.xlu0 %v115_v2 }
 0x206   :  { %v110_v3 = vpop.xlane.xlu2 %109 }
 0x207   :  { %v112_v4 = vmul.f32 %v110_v3, %v271_v16 }
 0x209   :  { %v114_v5 = vsub.f32 %v105_v62, %v112_v4 }
 0x20b   :  { %v116_v6 = vmul.f32 %v114_v5, %v114_v5 }
 0x20d   :  { %119 = vadd.xlane.f32.xlu1 %v116_v6 }
 0x278   :  { %v118_v7 = vpop.xlane.xlu0 %117 }
 0x279   :  { %v121_v8 = vmul.f32 %v118_v7, %v271_v16 }
 0x27b   :  { %v123_v9 = vadd.f32 1e-05, %v121_v8 }
 0x27d   :  { %193 = vrsqrt.f32 %v123_v9  ;;  %vm131_vm8 = vweird.f32 %v123_v9 }
 0x280   :  { %v120_v10 = vpop.xlane.xlu1 %119 }
 0x281   :  { %v122_v11 = vmul.f32 %v120_v10, %v271_v16 }
 0x283   :  { %v194_v12 = vpop.eup %193  ;;  %v124_v13 = vadd.f32 1e-05, %v122_v11 }
 0x284   :  { %v126_v14 = vmul.f32 %v194_v12, %v123_v9  ;;  %vm132_vm7 = vweird.f32 %v194_v12 }
 0x285   :  { %195 = vrsqrt.f32 %v124_v13  ;;  %vm133_vm9 = vmor %vm131_vm8, %vm132_vm7  ;;  %vm141_vm11 = vweird.f32 %v124_v13 }
 0x286   :  { %v127_v15 = vmul.f32 %v194_v12, %v126_v14 }
 0x288   :  { %v128_v17 = vmul.f32 0.5, %v127_v15 }
 0x28a   :  { %v129_v18 = vsub.f32 1.5, %v128_v17 }
 0x28b   :  { %v196_v19 = vpop.eup %195 }
 0x28c   :  { %v130_v20 = vmul.f32 %v194_v12, %v129_v18  ;;  %v136_v21 = vmul.f32 %v196_v19, %v124_v13  ;;  %vm142_vm10 = vweird.f32 %v196_v19 }
 0x28d   :  { %vm143_vm12 = vmor %vm141_vm11, %vm142_vm10 }
 0x28e   :  { %v134_v22 = vsel %vm133_vm9, %v194_v12, %v130_v20  ;;  %v137_v23 = vmul.f32 %v196_v19, %v136_v21 }
 0x28f   :  { %v145_v24 = vmul.f32 %v134_v22, %v113_v1 }
 0x290   :  { %v138_v25 = vmul.f32 0.5, %v137_v23 }
 0x291   :  { %147 = vst [vmem:[#allocation2] sm:$0xff] %v145_v24 }
 0x292   :  { %v139_v26 = vsub.f32 1.5, %v138_v25 }
 0x294   :  { %v140_v16 = vmul.f32 %v196_v19, %v139_v26 }
 0x296   :  { %v144_v27 = vsel %vm143_vm12, %v196_v19, %v140_v16 }
 0x297   :  { %v146_v28 = vmul.f32 %v144_v27, %v114_v5 }
 0x299   :  { %148 = vst [vmem:[#allocation2 + $0x8] sm:$0xff] %v146_v28 }
 0x29a   :  { %161 = dma.vmem_to_hbm [thread:$0]  %s154_s23, 256, %s156_s1, [#allocation3], %s225_s25, %s225_s25, %s226_s26  }
 0x29b   :  { %221 = dma.done.wait [#allocation3], 256  }
 0x29c   :  { %222 = vsyncadd [#allocation3], 4294967040 }
 0x29d   :  { %166 = vsyncpa [#allocation3], 1 }

// kernel: multi_head_attention.2
= control target key start
LH: loop header
LB: loop body
LE: loop exit
PB: predicated region body
PF: predicated region fallthrough
CT: control target
= control target key end

     0   :  { %vm293_vm0 = vcmask 64512   ;;  %s1500_s3 = inlined_call_operand.vmem [shape: f32[128,384], index: 3, kind: input, shape index: {}]   ;;  %s1501_s4 = inlined_call_operand.vmem [shape: f32[128,128], index: 4, kind: input, shape index: {}]   ;;  %s1502_s0 = inlined_call_operand.vmem [shape: f32[2,8,128], index: 0, kind: input, shape index: {}]   ;;  %s1503_s1 = inlined_call_operand.vmem [shape: f32[2,8,128], index: 1, kind: input, shape index: {}]   ;;  %s1504_s5 = inlined_call_operand.vmem [shape: f32[128,128], index: 5, kind: input, shape index: {}]   ;;  %s1505_s2 = inlined_call_operand.vmem [shape: f32[2,8,128], index: 2, kind: input, shape index: {}]   ;;  %s1506_s7 = inlined_call_operand.vmem [shape: f32[2,8,128], index: 7, kind: output, shape index: {0}]   ;;  %s1507_s6 = inlined_call_operand.vmem [shape: f32[128,128], index: 6, kind: input, shape index: {}]   ;;  %s1508_s8 = inlined_call_operand.vmem [shape: f32[2,8,128], index: 8, kind: output, shape index: {1}]  }
   0x1   :  { %v80_v0 = vld [vmem:[%s1500_s3 + $0x170] sm:$0xff]  ;;  %v77_v1 = vld [vmem:[%s1500_s3 + $0x158] sm:$0xff]  ;;  %v74_v2 = vld [vmem:[%s1500_s3 + $0x140] sm:$0xff] }
   0x2   :  { %113 = vmatpush.msra.mxu1 %v80_v0  ;;  %v71_v3 = vld [vmem:[%s1500_s3 + $0x128] sm:$0xff]  ;;  %v68_v4 = vld [vmem:[%s1500_s3 + $0x110] sm:$0xff]  ;;  %v65_v5 = vld [vmem:[%s1500_s3 + $0xf8] sm:$0xff] }
   0x3   :  { %v62_v6 = vld [vmem:[%s1500_s3 + $0xe0] sm:$0xff]  ;;  %v59_v7 = vld [vmem:[%s1500_s3 + $0xc8] sm:$0xff]  ;;  %v56_v8 = vld [vmem:[%s1500_s3 + $0xb0] sm:$0xff] }
   0x4   :  { %114 = vmatpush.msra.mxu1 %v77_v1  ;;  %v53_v9 = vld [vmem:[%s1500_s3 + $0x98] sm:$0xff]  ;;  %v904_v11 = vld [vmem:[%s1501_s4 + $0x70] sm:$0xff]  ;;  %v50_v12 = vld [vmem:[%s1500_s3 + $0x80] sm:$0xff] }
   0x5   :  { %v899_v10 = vld [vmem:[%s1501_s4 + $0x78] sm:$0xff]  ;;  %v913_v13 = vld [vmem:[%s1501_s4 + $0x68] sm:$0xff]  ;;  %v922_v15 = vld [vmem:[%s1501_s4 + $0x60] sm:$0xff] }
   0x6   :  { %115 = vmatpush.msra.mxu1 %v74_v2  ;;  %223 = vmatpush.msra.mxu3 %v899_v10  ;;  %v47_v14 = vld [vmem:[%s1500_s3 + $0x68] sm:$0xff]  ;;  %v44_v16 = vld [vmem:[%s1500_s3 + $0x50] sm:$0xff]  ;;  %v931_v17 = vld [vmem:[%s1501_s4 + $0x58] sm:$0xff] }
   0x7   :  { %v41_v18 = vld [vmem:[%s1500_s3 + $0x38] sm:$0xff]  ;;  %v940_v19 = vld [vmem:[%s1501_s4 + $0x50] sm:$0xff]  ;;  %v38_v20 = vld [vmem:[%s1500_s3 + $0x20] sm:$0xff] }
   0x8   :  { %116 = vmatpush.msra.mxu1 %v71_v3  ;;  %224 = vmatpush.msra.mxu3 %v904_v11  ;;  %v949_v21 = vld [vmem:[%s1501_s4 + $0x48] sm:$0xff]  ;;  %v958_v23 = vld [vmem:[%s1502_s0] sm:$0xff]  ;;  %v983_v27 = vld [vmem:[%s1501_s4 + $0x38] sm:$0xff] }
   0x9   :  { %v35_v22 = vld [vmem:[%s1500_s3 + $0x8] sm:$0xff]  ;;  %v971_v25 = vld [vmem:[%s1503_s1] sm:$0xff]  ;;  %v988_v28 = vld [vmem:[%s1501_s4 + $0x30] sm:$0xff] }
   0xa   :  { %117 = vmatpush.msra.mxu1 %v68_v4  ;;  %225 = vmatpush.msra.mxu3 %v913_v13  ;;  %v965_v24 = vld [vmem:[%s1502_s0 + $0x8] sm:$0xff]  ;;  %v977_v26 = vld [vmem:[%s1501_s4 + $0x40] sm:$0xff]  ;;  %v1007_v31 = vld [vmem:[%s1501_s4 + $0x18] sm:$0xff] }
   0xb   :  { %v994_v29 = vld [vmem:[%s1501_s4 + $0x28] sm:$0xff]  ;;  %v1001_v30 = vld [vmem:[%s1501_s4 + $0x20] sm:$0xff]  ;;  %v1012_v32 = vld [vmem:[%s1501_s4 + $0x10] sm:$0xff] }
   0xc   :  { %118 = vmatpush.msra.mxu1 %v65_v5  ;;  %226 = vmatpush.msra.mxu3 %v922_v15  ;;  %v1018_v33 = vld [vmem:[%s1501_s4 + $0x8] sm:$0xff]  ;;  %v1025_v34 = vld [vmem:[%s1501_s4] sm:$0xff]  ;;  %v76_v36 = vld [vmem:[%s1500_s3 + $0x150] sm:$0xff] }
   0xd   :  { %v79_v35 = vld [vmem:[%s1500_s3 + $0x168] sm:$0xff]  ;;  %v73_v37 = vld [vmem:[%s1500_s3 + $0x138] sm:$0xff]  ;;  %v70_v38 = vld [vmem:[%s1500_s3 + $0x120] sm:$0xff] }
   0xe   :  { %119 = vmatpush.msra.mxu1 %v62_v6  ;;  %227 = vmatpush.msra.mxu3 %v931_v17  ;;  %v1043_v39 = vld [vmem:[%s1503_s1 + $0x8] sm:$0xff]  ;;  %v64_v41 = vld [vmem:[%s1500_s3 + $0xf0] sm:$0xff]  ;;  %v61_v42 = vld [vmem:[%s1500_s3 + $0xd8] sm:$0xff] }
   0xf   :  { %82 = vmatpush.msra.mxu0 %v79_v35  ;;  %v67_v40 = vld [vmem:[%s1500_s3 + $0x108] sm:$0xff]  ;;  %v58_v43 = vld [vmem:[%s1500_s3 + $0xc0] sm:$0xff]  ;;  %v52_v46 = vld [vmem:[%s1500_s3 + $0x90] sm:$0xff] }
  0x10   :  { %120 = vmatpush.msra.mxu1 %v59_v7  ;;  %228 = vmatpush.msra.mxu3 %v940_v19  ;;  %v55_v44 = vld [vmem:[%s1500_s3 + $0xa8] sm:$0xff]  ;;  %v49_v47 = vld [vmem:[%s1500_s3 + $0x78] sm:$0xff]  ;;  %v46_v48 = vld [vmem:[%s1500_s3 + $0x60] sm:$0xff] }
  0x11   :  { %83 = vmatpush.msra.mxu0 %v76_v36  ;;  %v43_v49 = vld [vmem:[%s1500_s3 + $0x48] sm:$0xff]  ;;  %v40_v51 = vld [vmem:[%s1500_s3 + $0x30] sm:$0xff]  ;;  %v37_v52 = vld [vmem:[%s1500_s3 + $0x18] sm:$0xff] }
  0x12   :  { %121 = vmatpush.msra.mxu1 %v56_v8  ;;  %229 = vmatpush.msra.mxu3 %v949_v21  ;;  %v34_v53 = vld [vmem:[%s1500_s3] sm:$0xff]  ;;  %v81_v55 = vld [vmem:[%s1500_s3 + $0x178] sm:$0xff]  ;;  %v1101_v58 = vld [vmem:[%s1504_s5 + $0x70] sm:$0xff] }
  0x13   :  { %84 = vmatpush.msra.mxu0 %v73_v37  ;;  %144 = vmatpush.msra.mxu2 %v81_v55  ;;  %v1092_v56 = vld [vmem:[%s1504_s5 + $0x78] sm:$0xff]  ;;  %v78_v57 = vld [vmem:[%s1500_s3 + $0x160] sm:$0xff]  ;;  %v75_v59 = vld [vmem:[%s1500_s3 + $0x148] sm:$0xff] }
  0x14   :  { %122 = vmatpush.msra.mxu1 %v53_v9  ;;  %230 = vmatpush.msra.mxu3 %v977_v26  ;;  %v1110_v60 = vld [vmem:[%s1504_s5 + $0x68] sm:$0xff]  ;;  %v72_v61 = vld [vmem:[%s1500_s3 + $0x130] sm:$0xff]  ;;  %v1118_v62 = vld [vmem:[%s1504_s5 + $0x60] sm:$0xff] }
  0x15   :  { %85 = vmatpush.msra.mxu0 %v70_v38  ;;  %145 = vmatpush.msra.mxu2 %v78_v57  ;;  %v69_v63 = vld [vmem:[%s1500_s3 + $0x118] sm:$0xff]  ;;  %v66_v1 = vld [vmem:[%s1500_s3 + $0x100] sm:$0xff]  ;;  %v1136_v2 = vld [vmem:[%s1504_s5 + $0x50] sm:$0xff] }
  0x16   :  { %123 = vmatpush.msra.mxu1 %v50_v12  ;;  %231 = vmatpush.msra.mxu3 %v983_v27  ;;  %v1127_v0 = vld [vmem:[%s1504_s5 + $0x58] sm:$0xff]  ;;  %v63_v3 = vld [vmem:[%s1500_s3 + $0xe8] sm:$0xff]  ;;  %v60_v5 = vld [vmem:[%s1500_s3 + $0xd0] sm:$0xff] }
  0x17   :  { %86 = vmatpush.msra.mxu0 %v67_v40  ;;  %146 = vmatpush.msra.mxu2 %v75_v59  ;;  %v1145_v4 = vld [vmem:[%s1504_s5 + $0x48] sm:$0xff]  ;;  %v1154_v6 = vld [vmem:[%s1504_s5 + $0x40] sm:$0xff]  ;;  %v57_v7 = vld [vmem:[%s1500_s3 + $0xb8] sm:$0xff] }
  0x18   :  { %124 = vmatpush.msra.mxu1 %v47_v14  ;;  %232 = vmatpush.msra.mxu3 %v988_v28  ;;  %v1163_v8 = vld [vmem:[%s1504_s5 + $0x38] sm:$0xff]  ;;  %v54_v9 = vld [vmem:[%s1500_s3 + $0xa0] sm:$0xff]  ;;  %v1172_v12 = vld [vmem:[%s1504_s5 + $0x30] sm:$0xff] }
  0x19   :  { %87 = vmatpush.msra.mxu0 %v64_v41  ;;  %147 = vmatpush.msra.mxu2 %v72_v61  ;;  %v51_v14 = vld [vmem:[%s1500_s3 + $0x88] sm:$0xff]  ;;  %v1190_v35 = vld [vmem:[%s1504_s5 + $0x20] sm:$0xff]  ;;  %v45_v37 = vld [vmem:[%s1500_s3 + $0x58] sm:$0xff] }
  0x1a   :  { %125 = vmatpush.msra.mxu1 %v44_v16  ;;  %233 = vmatpush.msra.mxu3 %v994_v29  ;;  %v1199_v38 = vld [vmem:[%s1504_s5 + $0x18] sm:$0xff]  ;;  %v42_v41 = vld [vmem:[%s1500_s3 + $0x40] sm:$0xff] }
  0x1b   :  { %88 = vmatpush.msra.mxu0 %v61_v42  ;;  %148 = vmatpush.msra.mxu2 %v69_v63  ;;  %v1208_v42 = vld [vmem:[%s1504_s5 + $0x10] sm:$0xff] }
  0x1c   :  { %126 = vmatpush.msra.mxu1 %v41_v18  ;;  %234 = vmatpush.msra.mxu3 %v1001_v30  ;;  %v1181_v18 = vld [vmem:[%s1504_s5 + $0x28] sm:$0xff] }
  0x1d   :  { %89 = vmatpush.msra.mxu0 %v58_v43  ;;  %149 = vmatpush.msra.mxu2 %v66_v1 }
  0x1e   :  { %127 = vmatpush.msra.mxu1 %v38_v20  ;;  %235 = vmatpush.msra.mxu3 %v1007_v31 }
  0x1f   :  { %90 = vmatpush.msra.mxu0 %v55_v44  ;;  %150 = vmatpush.msra.mxu2 %v63_v3  ;;  %v39_v44 = vld [vmem:[%s1500_s3 + $0x28] sm:$0xff] }
  0x20   :  { %128 = vmatpush.msra.mxu1 %v35_v22  ;;  %236 = vmatpush.msra.mxu3 %v1012_v32  ;;  %v48_v22 = vld [vmem:[%s1500_s3 + $0x70] sm:$0xff] }
  0x21   :  { %129 = vmatmul.f32.vlgmr.msra.gmra.mxu1 %v958_v23  ;;  %91 = vmatpush.msra.mxu0 %v52_v46 }
  0x22   :  { %237 = vmatpush.msra.mxu3 %v1018_v33  ;;  %151 = vmatpush.msra.mxu2 %v60_v5 }
  0x23   :  { %92 = vmatpush.msra.mxu0 %v49_v47  ;;  %v36_v47 = vld [vmem:[%s1500_s3 + $0x10] sm:$0xff] }
  0x24   :  { %238 = vmatpush.msra.mxu3 %v1025_v34  ;;  %152 = vmatpush.msra.mxu2 %v57_v7 }
  0x25   :  { %93 = vmatpush.msra.mxu0 %v46_v48  ;;  %v1226_v48 = vld [vmem:[%s1504_s5] sm:$0xff] }
  0x26   :  { %153 = vmatpush.msra.mxu2 %v54_v9 }
  0x27   :  { %94 = vmatpush.msra.mxu0 %v43_v49 }
  0x28   :  { %154 = vmatpush.msra.mxu2 %v51_v14 }
  0x29   :  { %131 = vmatmul.f32.gmra.mxu1 %v965_v24  ;;  %95 = vmatpush.msra.mxu0 %v40_v51  ;;  %v32_v51 = vld [vmem:[%s1505_s2] sm:$0xff] }
  0x2a   :  { %155 = vmatpush.msra.mxu2 %v48_v22 }
  0x2b   :  { %96 = vmatpush.msra.mxu0 %v37_v52 }
  0x2c   :  { %156 = vmatpush.msra.mxu2 %v45_v37 }
  0x2d   :  { %97 = vmatpush.msra.mxu0 %v34_v53 }
  0x2e   :  { %98 = vmatmul.f32.vlgmr.msra.gmra.mxu0 %v958_v23  ;;  %157 = vmatpush.msra.mxu2 %v42_v41 }
  0x2f   :  { %423 = vmatpush.msrb.mxu0 %v1092_v56 }
  0x30   :  { %158 = vmatpush.msra.mxu2 %v39_v44 }
  0x31   :  { %133 = vmatmul.f32.gmra.mxu1 %v971_v25  ;;  %424 = vmatpush.msrb.mxu0 %v1101_v58 }
  0x32   :  { %159 = vmatpush.msra.mxu2 %v36_v47 }
  0x33   :  { %425 = vmatpush.msrb.mxu0 %v1110_v60  ;;  %160 = vmatmul.f32.vlgmr.msra.gmra.mxu2 %v958_v23  ;;  %v33_v23 = vld [vmem:[%s1505_s2 + $0x8] sm:$0xff] }
  0x35   :  { %426 = vmatpush.msrb.mxu0 %v1118_v62 }
  0x36   :  { %101 = vmatmul.f32.gmra.mxu0 %v965_v24 }
  0x37   :  { %427 = vmatpush.msrb.mxu0 %v1127_v0 }
  0x39   :  { %136 = vmatmul.f32.gmra.mxu1 %v1043_v39  ;;  %428 = vmatpush.msrb.mxu0 %v1136_v2 }
  0x3b   :  { %429 = vmatpush.msrb.mxu0 %v1145_v4  ;;  %162 = vmatmul.f32.gmra.mxu2 %v965_v24 }
  0x3d   :  { %430 = vmatpush.msrb.mxu0 %v1154_v6 }
  0x3e   :  { %104 = vmatmul.f32.gmra.mxu0 %v971_v25 }
  0x3f   :  { %431 = vmatpush.msrb.mxu0 %v1163_v8 }
  0x41   :  { %432 = vmatpush.msrb.mxu0 %v1172_v12  ;;  %139 = vmatmul.f32.gmra.mxu1 %v32_v51 }
  0x43   :  { %433 = vmatpush.msrb.mxu0 %v1181_v18  ;;  %164 = vmatmul.f32.gmra.mxu2 %v971_v25 }
  0x45   :  { %434 = vmatpush.msrb.mxu0 %v1190_v35 }
  0x46   :  { %106 = vmatmul.f32.gmra.mxu0 %v1043_v39 }
  0x47   :  { %435 = vmatpush.msrb.mxu0 %v1199_v38 }
  0x49   :  { %436 = vmatpush.msrb.mxu0 %v1208_v42  ;;  %141 = vmatmul.f32.gmra.mxu1 %v33_v23 }
  0x4b   :  { %166 = vmatmul.f32.gmra.mxu2 %v1043_v39 }
  0x4e   :  { %108 = vmatmul.f32.gmra.mxu0 %v32_v51 }
  0x53   :  { %168 = vmatmul.f32.gmra.mxu2 %v32_v51 }
  0x56   :  { %110 = vmatmul.f32.gmra.mxu0 %v33_v23 }
  0x5b   :  { %171 = vmatmul.f32.gmra.mxu2 %v33_v23 }
  0x9e   :  { %v130_v45 = vpop.f32.mrf.mxu1 }
  0x9f   :  { %v1217_v45 = vld [vmem:[%s1504_s5 + $0x8] sm:$0xff] }
  0xa0   :  { %437 = vmatpush.msrb.mxu0 %v1217_v45 }
  0xa2   :  { %438 = vmatpush.msrb.mxu0 %v1226_v48 }
  0xa4   :  { %491 = vmatpush.msra.mxu0 %v899_v10 }
  0xa6   :  { %v132_v50 = vpop.f32.mrf.mxu1  ;;  %492 = vmatpush.msra.mxu0 %v904_v11 }
  0xa8   :  { %493 = vmatpush.msra.mxu0 %v913_v13 }
  0xaa   :  { %494 = vmatpush.msra.mxu0 %v922_v15 }
  0xab   :  { %v99_v52 = vpop.f32.mrf.mxu0 }
  0xac   :  { %495 = vmatpush.msra.mxu0 %v931_v17 }
  0xad   :  { %439 = vmatmul.f32.vlgmr.msrb.gmra.mxu0 %v99_v52 }
  0xae   :  { %v134_v54 = vpop.f32.mrf.mxu1  ;;  %496 = vmatpush.msra.mxu0 %v940_v19 }
  0xaf   :  { %239 = vmatmul.f32.vlgmr.msra.gmra.mxu3 %v134_v54 }
  0xb0   :  { %497 = vmatpush.msra.mxu0 %v949_v21 }
  0xb2   :  { %498 = vmatpush.msra.mxu0 %v977_v26 }
  0xb3   :  { %v1242_v54 = vpop.f32.mrf.mxu0 }
  0xb4   :  { %499 = vmatpush.msra.mxu0 %v983_v27 }
  0xb6   :  { %500 = vmatpush.msra.mxu0 %v988_v28  ;;  %v137_v26 = vpop.f32.mrf.mxu1 }
  0xb8   :  { %501 = vmatpush.msra.mxu0 %v994_v29  ;;  %v161_v29 = vpop.f32.mrf.mxu2 }
  0xb9   :  { %v1315_v29 = vld [vmem:[%s1507_s6 + $0x50] sm:$0xff] }
  0xba   :  { %502 = vmatpush.msra.mxu0 %v1001_v30 }
  0xbb   :  { %v105_v15 = vpop.f32.mrf.mxu0 }
  0xbc   :  { %503 = vmatpush.msra.mxu0 %v1007_v31 }
  0xbe   :  { %504 = vmatpush.msra.mxu0 %v1012_v32  ;;  %v140_v27 = vpop.f32.mrf.mxu1 }
  0xbf   :  { %v1304_v27 = vld [vmem:[%s1507_s6 + $0x60] sm:$0xff] }
  0xc0   :  { %505 = vmatpush.msra.mxu0 %v1018_v33  ;;  %v163_v32 = vpop.f32.mrf.mxu2 }
  0xc1   :  { %v1329_v32 = vld [vmem:[%s1507_s6 + $0x40] sm:$0xff] }
  0xc2   :  { %506 = vmatpush.msra.mxu0 %v1025_v34 }
  0xc3   :  { %v107_v19 = vpop.f32.mrf.mxu0  ;;  %507 = vmatmul.f32.vlgmr.msra.gmra.mxu0 %v137_v26 }
  0xc4   :  { %v1285_v19 = vld [vmem:[%s1507_s6 + $0x78] sm:$0xff] }
  0xc5   :  { %448 = vmatpush.msrb.mxu1 %v1285_v19 }
  0xc6   :  { %v142_v30 = vpop.f32.mrf.mxu1 }
  0xc8   :  { %v165_v39 = vpop.f32.mrf.mxu2 }
  0xcb   :  { %v109_v28 = vpop.f32.mrf.mxu0 }
  0xcc   :  { %v1309_v28 = vld [vmem:[%s1507_s6 + $0x58] sm:$0xff] }
  0xd0   :  { %v167_v59 = vpop.f32.mrf.mxu2 }
  0xd1   :  { %v1338_v59 = vld [vmem:[%s1507_s6 + $0x38] sm:$0xff] }
  0xd3   :  { %v111_v31 = vpop.f32.mrf.mxu0 }
  0xd4   :  { %v1324_v31 = vld [vmem:[%s1507_s6 + $0x48] sm:$0xff] }
  0xd8   :  { %v169_v3 = vpop.f32.mrf.mxu2 }
  0xd9   :  { %357 = vmatpush.msrb.mxu3 %v169_v3 }
 0x12a   :  { %v1261_v33 = vpop.f32.mrf.mxu0 }
 0x132   :  { %v240_v16 = vpop.f32.mrf.mxu3 }
 0x133   :  { %v243_v20 = vrot.slane %v240_v16, 4 }
 0x135   :  { %v244_v36 = vmax.f32 %v240_v16, %v243_v20 }
 0x137   :  { %v245_v40 = vrot.slane %v244_v36, 2 }
 0x139   :  { %v246_v43 = vmax.f32 %v244_v36, %v245_v40 }
 0x13b   :  { %v247_v46 = vrot.slane %v246_v43, 1 }
 0x13d   :  { %v248_v49 = vmax.f32 %v246_v43, %v247_v46 }
 0x13f   :  { %v249_v50 = vsub.f32 %v240_v16, %v248_v49 }
 0x140   :  { %v508_v61 = vpop.f32.mrf.mxu0 }
 0x141   :  { %v250_v53 = vmul.f32 1.442695, %v249_v50  ;;  %v511_v34 = vrot.slane %v508_v61, 4 }
 0x143   :  { %805 = vpow2.f32 %v250_v53  ;;  %v512_v63 = vmax.f32 %v508_v61, %v511_v34  ;;  %v1349_v34 = vld [vmem:[%s1507_s6 + $0x28] sm:$0xff] }
 0x145   :  { %v513_v1 = vrot.slane %v512_v63, 2 }
 0x147   :  { %v514_v5 = vmax.f32 %v512_v63, %v513_v1  ;;  %v1355_v63 = vld [vmem:[%s1507_s6 + $0x20] sm:$0xff]  ;;  %v1361_v1 = vld [vmem:[%s1507_s6 + $0x18] sm:$0xff] }
 0x149   :  { %v806_v10 = vpop.eup %805  ;;  %v515_v7 = vrot.slane %v514_v5, 1 }
 0x14a   :  { %v252_v55 = vrot.slane %v806_v10, 4 }
 0x14b   :  { %v516_v9 = vmax.f32 %v514_v5, %v515_v7  ;;  %v1369_v5 = vld [vmem:[%s1507_s6 + $0x10] sm:$0xff]  ;;  %v1376_v7 = vld [vmem:[%s1507_s6 + $0x8] sm:$0xff] }
 0x14c   :  { %v253_v11 = vadd.f32 %v806_v10, %v252_v55 }
 0x14d   :  { %v517_v14 = vsub.f32 %v508_v61, %v516_v9  ;;  %v1343_v61 = vld [vmem:[%s1507_s6 + $0x30] sm:$0xff]  ;;  %v1382_v9 = vld [vmem:[%s1507_s6] sm:$0xff] }
 0x14e   :  { %v254_v13 = vrot.slane %v253_v11, 2 }
 0x14f   :  { %v518_v16 = vmul.f32 1.442695, %v517_v14 }
 0x150   :  { %v255_v24 = vadd.f32 %v254_v13, %v253_v11 }
 0x152   :  { %v256_v17 = vrot.slane %v255_v24, 1 }
 0x154   :  { %v257_v57 = vadd.f32 %v256_v17, %v255_v24 }
 0x156   :  { %807 = vrcp.f32 %v257_v57 }
 0x157   :  { %809 = vpow2.f32 %v518_v16 }
 0x15c   :  { %v808_v21 = vpop.eup %807 }
 0x15d   :  { %v259_v25 = vmul.f32 %v808_v21, %v806_v10  ;;  %v810_v20 = vpop.eup %809  ;;  %v1290_v21 = vld [vmem:[%s1507_s6 + $0x70] sm:$0xff] }
 0x15e   :  { %v520_v22 = vrot.slane %v810_v20, 4  ;;  %449 = vmatpush.msrb.mxu1 %v1290_v21 }
 0x15f   :  { %261 = vxpose.xlu0.b32.start.end [1/1] (short) %v259_v25, 128  ;;  %260 = vst [vmem:[%s1506_s7] sm:$0xff] %v259_v25  ;;  %v1296_v25 = vld [vmem:[%s1507_s6 + $0x68] sm:$0xff] }
 0x160   :  { %v521_v36 = vadd.f32 %v810_v20, %v520_v22  ;;  %450 = vmatpush.msrb.mxu1 %v1296_v25 }
 0x162   :  { %v522_v37 = vrot.slane %v521_v36, 2  ;;  %451 = vmatpush.msrb.mxu1 %v1304_v27 }
 0x164   :  { %v523_v40 = vadd.f32 %v522_v37, %v521_v36  ;;  %452 = vmatpush.msrb.mxu1 %v1309_v28 }
 0x166   :  { %v524_v41 = vrot.slane %v523_v40, 1  ;;  %453 = vmatpush.msrb.mxu1 %v1315_v29 }
 0x168   :  { %v525_v43 = vadd.f32 %v524_v41, %v523_v40  ;;  %454 = vmatpush.msrb.mxu1 %v1324_v31 }
 0x16a   :  { %811 = vrcp.f32 %v525_v43  ;;  %455 = vmatpush.msrb.mxu1 %v1329_v32 }
 0x16c   :  { %456 = vmatpush.msrb.mxu1 %v1338_v59 }
 0x16e   :  { %457 = vmatpush.msrb.mxu1 %v1343_v61 }
 0x170   :  { %v812_v46 = vpop.eup %811  ;;  %458 = vmatpush.msrb.mxu1 %v1349_v34 }
 0x171   :  { %v527_v47 = vmul.f32 %v812_v46, %v810_v20 }
 0x172   :  { %459 = vmatpush.msrb.mxu1 %v1355_v63 }
 0x173   :  { %530 = vxpose.xlu1.b32.start.end [1/1] (short) %v527_v47, 128  ;;  %784 = vst [vmem:[%s1506_s7 + $0x8] sm:$0xff] %v527_v47  ;;  %v1399_v47 = vpop.f32.mrf.mxu2 }
 0x174   :  { %460 = vmatpush.msrb.mxu1 %v1361_v1  ;;  %625 = vmatpush.msrb.mxu0 %v1399_v47 }
 0x176   :  { %461 = vmatpush.msrb.mxu1 %v1369_v5  ;;  %716 = vmatpush.msra.mxu0 %v1285_v19 }
 0x178   :  { %462 = vmatpush.msrb.mxu1 %v1376_v7  ;;  %717 = vmatpush.msra.mxu0 %v1290_v21 }
 0x17a   :  { %463 = vmatpush.msrb.mxu1 %v1382_v9  ;;  %718 = vmatpush.msra.mxu0 %v1296_v25 }
 0x17c   :  { %802 = vmatpush.msra.mxu1 %v1399_v47  ;;  %719 = vmatpush.msra.mxu0 %v1304_v27 }
 0x17e   :  { %720 = vmatpush.msra.mxu0 %v1309_v28 }
 0x180   :  { %721 = vmatpush.msra.mxu0 %v1315_v29 }
 0x182   :  { %722 = vmatpush.msra.mxu0 %v1324_v31 }
 0x184   :  { %723 = vmatpush.msra.mxu0 %v1329_v32 }
 0x186   :  { %724 = vmatpush.msra.mxu0 %v1338_v59 }
 0x188   :  { %725 = vmatpush.msra.mxu0 %v1343_v61 }
 0x18a   :  { %726 = vmatpush.msra.mxu0 %v1349_v34 }
 0x18c   :  { %727 = vmatpush.msra.mxu0 %v1355_v63 }
 0x18e   :  { %728 = vmatpush.msra.mxu0 %v1361_v1 }
 0x190   :  { %729 = vmatpush.msra.mxu0 %v1369_v5 }
 0x192   :  { %730 = vmatpush.msra.mxu0 %v1376_v7 }
 0x194   :  { %731 = vmatpush.msra.mxu0 %v1382_v9 }
 0x203   :  { %v277_v44 = vpop.trf.xlu0 }
 0x204   :  { %768 = vmatmul.msk.f32.vlgmr.msrb.gmra.mxu3 %vm293_vm0, %v277_v44 }
 0x20b   :  { %v278_v49 = vpop.trf.xlu0 }
 0x20c   :  { %769 = vmatmul.msk.f32.gmra.mxu3 %vm293_vm0, %v278_v49 }
 0x213   :  { %v279_v50 = vpop.trf.xlu0 }
 0x214   :  { %770 = vmatmul.msk.f32.gmra.mxu3 %vm293_vm0, %v279_v50 }
 0x217   :  { %v546_v43 = vpop.trf.xlu1 }
 0x218   :  { %785 = vmatmul.msk.f32.vlgmr.msrb.gmra.mxu0 %vm293_vm0, %v546_v43 }
 0x21b   :  { %v280_v51 = vpop.trf.xlu0 }
 0x21c   :  { %771 = vmatmul.msk.f32.gmra.mxu3 %vm293_vm0, %v280_v51 }
 0x21f   :  { %v547_v49 = vpop.trf.xlu1 }
 0x220   :  { %786 = vmatmul.msk.f32.gmra.mxu0 %vm293_vm0, %v547_v49 }
 0x223   :  { %v281_v52 = vpop.trf.xlu0 }
 0x224   :  { %772 = vmatmul.msk.f32.gmra.mxu3 %vm293_vm0, %v281_v52 }
 0x227   :  { %v548_v50 = vpop.trf.xlu1 }
 0x228   :  { %787 = vmatmul.msk.f32.gmra.mxu0 %vm293_vm0, %v548_v50 }
 0x22b   :  { %v282_v53 = vpop.trf.xlu0 }
 0x22c   :  { %773 = vmatmul.msk.f32.gmra.mxu3 %vm293_vm0, %v282_v53 }
 0x22f   :  { %v549_v52 = vpop.trf.xlu1 }
 0x230   :  { %788 = vmatmul.msk.f32.gmra.mxu0 %vm293_vm0, %v549_v52 }
 0x233   :  { %v283_v23 = vpop.trf.xlu0 }
 0x234   :  { %774 = vmatmul.msk.f32.gmra.mxu3 %vm293_vm0, %v283_v23 }
 0x237   :  { %v550_v23 = vpop.trf.xlu1 }
 0x23b   :  { %v284_v10 = vpop.trf.xlu0 }
 0x23c   :  { %775 = vmatmul.msk.f32.gmra.mxu3 %vm293_vm0, %v284_v10 }
 0x243   :  { %v285_v55 = vpop.trf.xlu0 }
 0x244   :  { %776 = vmatmul.msk.f32.gmra.mxu3 %vm293_vm0, %v285_v55  ;;  %v551_v55 = vpop.trf.xlu1 }
 0x248   :  { %443 = vmax.xlane.f32.xlu0 %v1261_v33 }
 0x24b   :  { %v286_v11 = vpop.trf.xlu0 }
 0x24c   :  { %777 = vmatmul.msk.f32.gmra.mxu3 %vm293_vm0, %v286_v11 }
 0x253   :  { %v287_v13 = vpop.trf.xlu0 }
 0x254   :  { %778 = vmatmul.msk.f32.gmra.mxu3 %vm293_vm0, %v287_v13  ;;  %v552_v13 = vpop.trf.xlu1 }
 0x25b   :  { %v288_v15 = vpop.trf.xlu0 }
 0x25c   :  { %779 = vmatmul.msk.f32.gmra.mxu3 %vm293_vm0, %v288_v15 }
 0x263   :  { %v289_v24 = vpop.trf.xlu0 }
 0x264   :  { %780 = vmatmul.msk.f32.gmra.mxu3 %vm293_vm0, %v289_v24  ;;  %v553_v24 = vpop.trf.xlu1 }
 0x26b   :  { %v290_v17 = vpop.trf.xlu0 }
 0x26c   :  { %781 = vmatmul.msk.f32.gmra.mxu3 %vm293_vm0, %v290_v17 }
 0x273   :  { %v291_v57 = vpop.trf.xlu0 }
 0x274   :  { %782 = vmatmul.msk.f32.gmra.mxu3 %vm293_vm0, %v291_v57 }
 0x27b   :  { %v292_v26 = vpop.trf.xlu0 }
 0x27c   :  { %783 = vmatmul.msk.f32.gmra.mxu3 %vm293_vm0, %v292_v26 }
 0x287   :  { %v1319_v30 = vpop.f32.mrf.mxu3 }
 0x28f   :  { %v1333_v39 = vpop.f32.mrf.mxu3 }
 0x297   :  { %v1363_v3 = vpop.f32.mrf.mxu3 }
 0x29f   :  { %v1384_v14 = vpop.f32.mrf.mxu3 }
 0x2a7   :  { %v1387_v16 = vpop.f32.mrf.mxu3 }
 0x2af   :  { %v1389_v20 = vpop.f32.mrf.mxu3 }
 0x2b7   :  { %v1391_v22 = vpop.f32.mrf.mxu3 }
 0x2bb   :  { %v444_v36 = vpop.xlane.xlu0 %443 }
 0x2bc   :  { %v445_v37 = vsub.f32 %v1261_v33, %v444_v36 }
 0x2be   :  { %v446_v40 = vmul.f32 1.442695, %v445_v37 }
 0x2bf   :  { %v1394_v41 = vpop.f32.mrf.mxu3 }
 0x2c0   :  { %813 = vpow2.f32 %v446_v40  ;;  %v554_v40 = vpop.trf.xlu1 }
 0x2c6   :  { %v1396_v44 = vpop.eup %813 }
 0x2c7   :  { %v383_v46 = vpop.f32.mrf.mxu3  ;;  %464 = vmatmul.f32.vlgmr.msrb.gmra.mxu1 %v1396_v44 }
 0x2c8   :  { %v555_v52 = vpop.trf.xlu1 }
 0x2cf   :  { %v386_v33 = vpop.f32.mrf.mxu3  ;;  %789 = vmatmul.msk.f32.vlgmr.msra.gmra.mxu1 %vm293_vm0, %v550_v23  ;;  %v415_v23 = vmul.f32 %v383_v46, %v1329_v32  ;;  %v410_v46 = vmul.f32 %v1384_v14, %v1361_v1 }
 0x2d0   :  { %v416_v50 = vmul.f32 %v386_v33, %v1324_v31  ;;  %v556_v33 = vpop.trf.xlu1 }
 0x2d7   :  { %v389_v51 = vpop.f32.mrf.mxu3  ;;  %790 = vmatmul.msk.f32.gmra.mxu1 %vm293_vm0, %v551_v55  ;;  %v411_v55 = vmul.f32 %v1387_v16, %v1355_v63 }
 0x2d8   :  { %v417_v49 = vmul.f32 %v389_v51, %v1315_v29  ;;  %v412_v51 = vmul.f32 %v1389_v20, %v1349_v34  ;;  %v557_v20 = vpop.trf.xlu1 }
 0x2df   :  { %v392_v53 = vpop.f32.mrf.mxu3  ;;  %791 = vmatmul.msk.f32.gmra.mxu1 %vm293_vm0, %v552_v13 }
 0x2e0   :  { %v418_v43 = vmul.f32 %v392_v53, %v1309_v28  ;;  %v413_v53 = vmul.f32 %v1391_v22, %v1343_v61  ;;  %v408_v22 = vmul.f32 %v1333_v39, %v1376_v7  ;;  %v558_v14 = vpop.trf.xlu1 }
 0x2e7   :  { %v395_v10 = vpop.f32.mrf.mxu3  ;;  %792 = vmatmul.msk.f32.gmra.mxu1 %vm293_vm0, %v553_v24 }
 0x2e8   :  { %v419_v37 = vmul.f32 %v395_v10, %v1304_v27  ;;  %v414_v10 = vmul.f32 %v1394_v41, %v1338_v59  ;;  %v409_v41 = vmul.f32 %v1363_v3, %v1369_v5  ;;  %v559_v16 = vpop.trf.xlu1 }
 0x2ef   :  { %v398_v11 = vpop.f32.mrf.mxu3  ;;  %793 = vmatmul.msk.f32.gmra.mxu1 %vm293_vm0, %v554_v40 }
 0x2f0   :  { %v420_v36 = vmul.f32 %v398_v11, %v1296_v25  ;;  %v407_v11 = vmul.f32 %v1319_v30, %v1382_v9  ;;  %v560_v30 = vpop.trf.xlu1 }
 0x2f7   :  { %v401_v15 = vpop.f32.mrf.mxu3  ;;  %794 = vmatmul.msk.f32.gmra.mxu1 %vm293_vm0, %v555_v52 }
 0x2f8   :  { %v421_v57 = vmul.f32 %v401_v15, %v1290_v21 }
 0x2ff   :  { %v404_v17 = vpop.f32.mrf.mxu3  ;;  %795 = vmatmul.msk.f32.gmra.mxu1 %vm293_vm0, %v556_v33 }
 0x300   :  { %v422_v26 = vmul.f32 %v404_v17, %v1285_v19 }
 0x302   :  { %470 = vmatpush.msrb.mxu2 %v422_v26 }
 0x304   :  { %471 = vmatpush.msrb.mxu2 %v421_v57 }
 0x306   :  { %472 = vmatpush.msrb.mxu2 %v420_v36 }
 0x307   :  { %796 = vmatmul.msk.f32.gmra.mxu1 %vm293_vm0, %v557_v20 }
 0x308   :  { %473 = vmatpush.msrb.mxu2 %v419_v37 }
 0x30a   :  { %474 = vmatpush.msrb.mxu2 %v418_v43 }
 0x30c   :  { %475 = vmatpush.msrb.mxu2 %v417_v49 }
 0x30e   :  { %476 = vmatpush.msrb.mxu2 %v416_v50 }
 0x30f   :  { %797 = vmatmul.msk.f32.gmra.mxu1 %vm293_vm0, %v558_v14 }
 0x310   :  { %477 = vmatpush.msrb.mxu2 %v415_v23 }
 0x312   :  { %478 = vmatpush.msrb.mxu2 %v414_v10 }
 0x314   :  { %479 = vmatpush.msrb.mxu2 %v413_v53 }
 0x316   :  { %480 = vmatpush.msrb.mxu2 %v412_v51 }
 0x317   :  { %798 = vmatmul.msk.f32.gmra.mxu1 %vm293_vm0, %v559_v16 }
 0x318   :  { %481 = vmatpush.msrb.mxu2 %v411_v55 }
 0x31a   :  { %482 = vmatpush.msrb.mxu2 %v410_v46 }
 0x31c   :  { %483 = vmatpush.msrb.mxu2 %v409_v41 }
 0x31e   :  { %484 = vmatpush.msrb.mxu2 %v408_v22 }
 0x320   :  { %485 = vmatpush.msrb.mxu2 %v407_v11 }
 0x322   :  { %803 = vmatpush.msra.mxu2 %v1399_v47  ;;  %v561_v47 = vpop.trf.xlu1 }
 0x344   :  { %v465_v3 = vpop.f32.mrf.mxu1 }
 0x345   :  { %815 = vrcp.f32 %v465_v3 }
 0x34b   :  { %v816_v39 = vpop.eup %815 }
 0x34c   :  { %v469_v13 = vmul.f32 %v816_v39, %v1396_v44 }
 0x34e   :  { %486 = vmatmul.f32.vlgmr.msrb.gmra.mxu2 %v469_v13 }
 0x34f   :  { %691 = vmatpush.msrb.mxu2 %v1092_v56  ;;  %v639_v56 = vpop.f32.mrf.mxu1 }
 0x350   :  { %v679_v36 = vmul.f32 %v639_v56, %v1355_v63 }
 0x351   :  { %692 = vmatpush.msrb.mxu2 %v1101_v58 }
 0x353   :  { %693 = vmatpush.msrb.mxu2 %v1110_v60 }
 0x355   :  { %694 = vmatpush.msrb.mxu2 %v1118_v62 }
 0x356   :  { %799 = vmatmul.msk.f32.vlgmr.msra.gmra.mxu2 %vm293_vm0, %v560_v30 }
 0x357   :  { %695 = vmatpush.msrb.mxu2 %v1127_v0  ;;  %v642_v58 = vpop.f32.mrf.mxu1 }
 0x359   :  { %696 = vmatpush.msrb.mxu2 %v1136_v2 }
 0x35b   :  { %697 = vmatpush.msrb.mxu2 %v1145_v4 }
 0x35d   :  { %698 = vmatpush.msrb.mxu2 %v1154_v6 }
 0x35e   :  { %800 = vmatmul.msk.f32.gmra.mxu2 %vm293_vm0, %v561_v47 }
 0x35f   :  { %699 = vmatpush.msrb.mxu2 %v1163_v8  ;;  %v645_v60 = vpop.f32.mrf.mxu1 }
 0x361   :  { %700 = vmatpush.msrb.mxu2 %v1172_v12  ;;  %v627_v12 = vpop.f32.mrf.mxu0 }
 0x362   :  { %v675_v37 = vmul.f32 %v627_v12, %v1382_v9 }
 0x363   :  { %701 = vmatpush.msrb.mxu2 %v1181_v18 }
 0x365   :  { %702 = vmatpush.msrb.mxu2 %v1190_v35 }
 0x367   :  { %703 = vmatpush.msrb.mxu2 %v1199_v38  ;;  %v648_v62 = vpop.f32.mrf.mxu1 }
 0x369   :  { %704 = vmatpush.msrb.mxu2 %v1208_v42 }
 0x36b   :  { %705 = vmatpush.msrb.mxu2 %v1217_v45  ;;  %v630_v45 = vpop.f32.mrf.mxu0 }
 0x36d   :  { %706 = vmatpush.msrb.mxu2 %v1226_v48 }
 0x36e   :  { %707 = vmatmul.f32.vlgmr.msrb.gmra.mxu2 %v1242_v54 }
 0x36f   :  { %v651_v0 = vpop.f32.mrf.mxu1 }
 0x370   :  { %v683_v26 = vmul.f32 %v651_v0, %v1329_v32 }
 0x373   :  { %v633_v57 = vpop.f32.mrf.mxu0 }
 0x374   :  { %v677_v32 = vmul.f32 %v633_v57, %v1369_v5 }
 0x377   :  { %v654_v2 = vpop.f32.mrf.mxu1 }
 0x37f   :  { %v657_v4 = vpop.f32.mrf.mxu1 }
 0x380   :  { %v685_v17 = vmul.f32 %v657_v4, %v1315_v29  ;;  %v636_v29 = vpop.f32.mrf.mxu0 }
 0x387   :  { %v660_v6 = vpop.f32.mrf.mxu1 }
 0x388   :  { %v686_v24 = vmul.f32 %v660_v6, %v1309_v28  ;;  %v680_v28 = vmul.f32 %v642_v58, %v1349_v34 }
 0x38f   :  { %v663_v18 = vpop.f32.mrf.mxu1 }
 0x390   :  { %v687_v15 = vmul.f32 %v663_v18, %v1304_v27  ;;  %v681_v27 = vmul.f32 %v645_v60, %v1343_v61 }
 0x397   :  { %v666_v48 = vpop.f32.mrf.mxu1 }
 0x398   :  { %v688_v44 = vmul.f32 %v666_v48, %v1296_v25  ;;  %v682_v25 = vmul.f32 %v648_v62, %v1338_v59  ;;  %v676_v59 = vmul.f32 %v630_v45, %v1376_v7 }
 0x3d1   :  { %v487_v8 = vpop.f32.mrf.mxu2 }
 0x3d2   :  { %490 = vst [vmem:[%s1508_s8] sm:$0xff] %v487_v8 }
 0x3d9   :  { %v669_v35 = vpop.f32.mrf.mxu2 }
 0x3da   :  { %v689_v54 = vmul.f32 %v669_v35, %v1290_v21 }
 0x3e1   :  { %v672_v38 = vpop.f32.mrf.mxu2 }
 0x3e2   :  { %v690_v42 = vmul.f32 %v672_v38, %v1285_v19  ;;  %v684_v19 = vmul.f32 %v654_v2, %v1324_v31  ;;  %v678_v31 = vmul.f32 %v636_v29, %v1361_v1 }
 0x3e4   :  { %738 = vmatpush.msra.mxu2 %v690_v42 }
 0x3e6   :  { %739 = vmatpush.msra.mxu2 %v689_v54 }
 0x3e8   :  { %740 = vmatpush.msra.mxu2 %v688_v44 }
 0x3ea   :  { %741 = vmatpush.msra.mxu2 %v687_v15 }
 0x3ec   :  { %742 = vmatpush.msra.mxu2 %v686_v24 }
 0x3ee   :  { %743 = vmatpush.msra.mxu2 %v685_v17 }
 0x3f0   :  { %744 = vmatpush.msra.mxu2 %v684_v19 }
 0x3f1   :  { %v708_v21 = vpop.f32.mrf.mxu2 }
 0x3f2   :  { %711 = vmax.xlane.f32.xlu1 %v708_v21  ;;  %745 = vmatpush.msra.mxu2 %v683_v26 }
 0x3f4   :  { %746 = vmatpush.msra.mxu2 %v682_v25 }
 0x3f6   :  { %747 = vmatpush.msra.mxu2 %v681_v27 }
 0x3f8   :  { %748 = vmatpush.msra.mxu2 %v680_v28 }
 0x3fa   :  { %749 = vmatpush.msra.mxu2 %v679_v36 }
 0x3fc   :  { %750 = vmatpush.msra.mxu2 %v678_v31 }
 0x3fe   :  { %751 = vmatpush.msra.mxu2 %v677_v32 }
 0x400   :  { %752 = vmatpush.msra.mxu2 %v676_v59 }
 0x402   :  { %753 = vmatpush.msra.mxu2 %v675_v37 }
 0x465   :  { %v712_v61 = vpop.xlane.xlu1 %711 }
 0x466   :  { %v713_v34 = vsub.f32 %v708_v21, %v712_v61 }
 0x468   :  { %v714_v40 = vmul.f32 1.442695, %v713_v34 }
 0x46a   :  { %817 = vpow2.f32 %v714_v40 }
 0x470   :  { %v818_v43 = vpop.eup %817 }
 0x471   :  { %732 = vmatmul.f32.vlgmr.msra.gmra.mxu0 %v818_v43 }
 0x4ee   :  { %v733_v63 = vpop.f32.mrf.mxu0 }
 0x4ef   :  { %819 = vrcp.f32 %v733_v63 }
 0x4f5   :  { %v820_v1 = vpop.eup %819 }
 0x4f6   :  { %v737_v49 = vmul.f32 %v820_v1, %v818_v43 }
 0x4f8   :  { %754 = vmatmul.f32.vlgmr.msra.gmra.mxu2 %v737_v49 }
 0x57b   :  { %v755_v5 = vpop.f32.mrf.mxu2 }
 0x57c   :  { %801 = vst [vmem:[%s1508_s8 + $0x8] sm:$0xff] %v755_v5 }

</bundles_post_ra>
